<compile_context>
chip_gen: v7x
topology: tpu7x:2x2x1
jax: 0.10.0
libtpu: 0.0.40
codegen_flags: <defaults>
</compile_context>

<pallas_src>
from collections import OrderedDict

import jax
import jax.numpy as jnp
from jax import lax
from jax.experimental import pallas as pl
from jax.experimental.pallas import tpu as pltpu

CPAD = 128  # lane-dense output-channel padding


def _round_up(x, m):
    return (x + m - 1) // m * m


# ----------------------- fused conv-as-matmul kernel ----------------------- #
def _matmul_bias_relu(patches, w, b, tm):
    """(Mp, Kp) bf16 @ (Kp, 128) bf16 -> +bias -> ReLU -> (Mp, 128) bf16."""
    Mp, Kp = patches.shape

    def kernel(x_ref, w_ref, b_ref, o_ref):
        acc = jnp.dot(x_ref[...], w_ref[...],
                      preferred_element_type=jnp.float32)
        o_ref[...] = jnp.maximum(acc + b_ref[...], 0.0).astype(o_ref.dtype)

    return pl.pallas_call(
        kernel,
        out_shape=jax.ShapeDtypeStruct((Mp, CPAD), jnp.bfloat16),
        grid=(Mp // tm,),
        in_specs=[pl.BlockSpec((tm, Kp), lambda m: (m, 0)),
                  pl.BlockSpec((Kp, CPAD), lambda m: (0, 0)),
                  pl.BlockSpec((1, CPAD), lambda m: (0, 0))],
        out_specs=pl.BlockSpec((tm, CPAD), lambda m: (m, 0)),
        compiler_params=pltpu.CompilerParams(
            dimension_semantics=("parallel",)),
    )(patches, w, b)


# ------------------------------ im2col glue -------------------------------- #
def _im2col_s2(x_nhwc, cin, kpad, tm):
    """3x3 / stride-2 / pad-1 im2col of the *real* channels.

    Rows are (n, ho, wo) flattened (batch collapsed into M), columns are the
    taps' real channels in (kh, kw, c) order, zero-padded to kpad; rows are
    zero-padded up to a multiple of tm (junk rows are sliced off by the caller).
    """
    N, H, W, _ = x_nhwc.shape
    # TODO(synk): odd H/W (ceil-mode stride-2 outputs) not supported by this packing.
    assert H % 2 == 0 and W % 2 == 0, "even spatial dims required"
    Ho, Wo = H // 2, W // 2
    xp = jnp.pad(x_nhwc[..., :cin], ((0, 0), (1, 1), (1, 1), (0, 0)))
    cols = [xp[:, kh:kh + 2 * Ho:2, kw:kw + 2 * Wo:2, :]
            for kh in range(3) for kw in range(3)]
    patches = jnp.concatenate(cols, axis=-1).reshape(N * Ho * Wo, 9 * cin)
    m_real = N * Ho * Wo
    mp = _round_up(m_real, tm)
    patches = jnp.pad(patches, ((0, mp - m_real), (0, kpad - 9 * cin)))
    return patches, Ho, Wo, m_real


# -------------------- F.interpolate(mask, mode='nearest') ------------------ #
def interpolate_mask_nearest(mask_bool, out_hw):
    """Matches F.interpolate(mask[None].float(), size=(h, w)).bool()[0]."""
    N, H, W = mask_bool.shape
    h, w = out_hw
    idx_h = jnp.floor(jnp.arange(h) * (H / h)).astype(jnp.int32)
    idx_w = jnp.floor(jnp.arange(w) * (W / w)).astype(jnp.int32)
    return mask_bool[:, idx_h][:, :, idx_w]


# ------------------------------ BackboneBase ------------------------------- #
class BackboneBasePallas:
    """Synthetic 5-stage conv backbone + BackboneBase.forward semantics."""

    # (stage name, out_channels); every stage is conv3x3 stride-2 + ReLU
    STAGES = [("stem", 8), ("layer1", 8), ("layer2", 16),
              ("layer3", 32), ("layer4", 64)]

    def __init__(self, key, train_backbone: bool, return_interm_layers: bool):
        self.params = {}       # packed bf16 weights used by the kernel
        self.raw_params = {}   # unpadded f32 weights (reference check)
        self.cins, self.couts, self.kpads = {}, {}, {}
        cin = 3
        for i, (name, cout) in enumerate(self.STAGES):
            kw_, kb = jax.random.split(jax.random.fold_in(key, i))
            w = 0.1 * jax.random.normal(kw_, (3, 3, cin, cout), jnp.float32)
            b = 0.01 * jax.random.normal(kb, (cout,), jnp.float32)
            self.raw_params[name] = (w, b)
            # Pack the 9 taps' real channels into K (im2col order (kh, kw, c)),
            # pad K to a lane-aligned multiple of 128 and Cout to 128 lanes.
            kpad = _round_up(9 * cin, 128)
            wk = jnp.zeros((kpad, CPAD), jnp.float32)
            wk = wk.at[:9 * cin, :cout].set(w.reshape(9 * cin, cout))
            bp = jnp.zeros((1, CPAD), jnp.float32).at[0, :cout].set(b)
            self.params[name] = (wk.astype(jnp.bfloat16), bp)
            self.cins[name], self.couts[name], self.kpads[name] = cin, cout, kpad
            cin = cout
        self.num_channels = cin
        if return_interm_layers:
            self.return_layers = {"layer1": "0", "layer2": "1",
                                  "layer3": "2", "layer4": "3"}
        else:
            # torchvision's IntermediateLayerGetter stringifies keys, so the
            # reference's {'layer4': 0} behaves as {'layer4': '0'}.
            self.return_layers = {"layer4": "0"}
        self._jit_forward = jax.jit(self._forward_impl)

    # IntermediateLayerGetter equivalent + NestedTensor mask handling, jitted.
    def _forward_impl(self, params, tensors_nchw, mask_bool):
        N, C, H, W = tensors_nchw.shape
        x = jnp.transpose(tensors_nchw, (0, 2, 3, 1)).astype(jnp.bfloat16)  # NHWC
        feats = OrderedDict()
        h, w = H, W
        for name, cout in self.STAGES:
            cin, kpad = self.cins[name], self.kpads[name]
            wk, bp = params[name]
            m_real = N * (h // 2) * (w // 2)
            tm = min(512, _round_up(m_real, 16))      # M-tile (VMEM-bounded)
            patches, Ho, Wo, m_real = _im2col_s2(x, cin, kpad, tm)
            y = _matmul_bias_relu(patches, wk, bp, tm)          # (Mp, 128) bf16
            y = y[:m_real].reshape(N, Ho, Wo, CPAD)
            if name in self.return_layers:
                feats[self.return_layers[name]] = jnp.transpose(
                    y[..., :cout].astype(jnp.float32), (0, 3, 1, 2))  # NCHW f32
            x = y                       # next stage's im2col slices [..., :cin]
            h, w = Ho, Wo

        out = OrderedDict()
        for name, xf in feats.items():
            m = interpolate_mask_nearest(mask_bool, xf.shape[-2:])
            out[name] = (xf, m)         # NestedTensor(x, mask) equivalent
        return out

    def forward(self, tensors_nchw, mask_bool):
        return self._jit_forward(self.params, tensors_nchw, mask_bool)


# --------------------- pure-JAX reference (correctness) -------------------- #
def _reference_forward(raw_params, stages, return_layers, tensors_nchw):
    x = jnp.transpose(tensors_nchw, (0, 2, 3, 1)).astype(jnp.bfloat16)
    feats = {}
    for name, _ in stages:
        w, b = raw_params[name]
        y = lax.conv_general_dilated(
            x, w.astype(jnp.bfloat16), window_strides=(2, 2),
            padding=((1, 1), (1, 1)),
            dimension_numbers=("NHWC", "HWIO", "NHWC"),
            preferred_element_type=jnp.float32)
        y = jnp.maximum(y + b[None, None, None, :], 0.0)
        if name in return_layers:
            feats[return_layers[name]] = jnp.transpose(y, (0, 3, 1, 2))
        x = y.astype(jnp.bfloat16)
    return feats


# ----------------------------------- main ---------------------------------- #
if __name__ == "__main__":
    key = jax.random.PRNGKey(0)
    k_img, k_mask, k_param = jax.random.split(key, 3)

    N, C, H, W = 2, 3, 64, 64
    tensors = jax.random.normal(k_img, (N, C, H, W), jnp.float32)
    mask = jax.random.bernoulli(k_mask, 0.3, (N, H, W))     # bool padding mask

    backbone = BackboneBasePallas(k_param, train_backbone=False,
                                  return_interm_layers=True)
    out = backbone.forward(tensors, mask)
    out = jax.block_until_ready(out)

    # shape / dtype sanity checks
    expected = {"0": (16, 8), "1": (8, 16), "2": (4, 32), "3": (2, 64)}
    for name, (xf, m) in out.items():
        s, ch = expected[name]
        assert xf.shape == (N, ch, s, s), (name, xf.shape)
        assert m.shape == (N, s, s) and m.dtype == jnp.bool_
    assert out["3"][0].shape[1] == backbone.num_channels

    # numerical check against a plain-JAX conv reference (same bf16 chain,
    # f32 accumulation); tolerance covers the kernel's bf16 output rounding.
    ref = _reference_forward(backbone.raw_params, backbone.STAGES,
                             backbone.return_layers, tensors)
    for name in expected:
        got = out[name][0]
        r = ref[name]
        assert got.shape == r.shape
        if not bool(jnp.allclose(got, r, atol=2e-2, rtol=2e-2)):
            raise AssertionError(
                f"mismatch on layer {name}: "
                f"max abs err {float(jnp.max(jnp.abs(got - r)))}")

    print("KERNEL_OK")
</pallas_src>

<mosaic_0001>
module attributes {stable_mosaic.version = 11 : i64} {
  func.func @kernel(%arg0: i32, %arg1: memref<512x128xbf16, #tpu.memory_space<vmem>>, %arg2: memref<128x128xbf16, #tpu.memory_space<vmem>>, %arg3: memref<1x128xf32, #tpu.memory_space<vmem>>, %arg4: memref<512x128xbf16, #tpu.memory_space<vmem>>) attributes {dimension_semantics = [#tpu.dimension_semantics<parallel>], iteration_bounds = array<i64: 4>, scalar_prefetch = 0 : i64, scratch_operands = 0 : i64, tpu.core_type = #tpu.core_type<tc>, window_params = [{transform_indices = @transform_0, window_bounds = array<i64: 512, 128>}, {pipeline_mode = #tpu.pipeline_mode<synchronous>, transform_indices = @transform_1, window_bounds = array<i64: 128, 128>}, {pipeline_mode = #tpu.pipeline_mode<synchronous>, transform_indices = @transform_2, window_bounds = array<i64: 1, 128>}, {transform_indices = @transform_3, window_bounds = array<i64: 512, 128>}]} {
    %c0 = arith.constant 0 : index
    %c0_0 = arith.constant 0 : index
    %0 = vector.load %arg1[%c0, %c0_0] : memref<512x128xbf16, #tpu.memory_space<vmem>>, vector<512x128xbf16>
    %c0_1 = arith.constant 0 : index
    %c0_2 = arith.constant 0 : index
    %1 = vector.load %arg2[%c0_1, %c0_2] : memref<128x128xbf16, #tpu.memory_space<vmem>>, vector<128x128xbf16>
    %cst = arith.constant dense<0.000000e+00> : vector<512x128xf32>
    %2 = tpu.matmul %0, %1, %cst {dimension_numbers = #tpu.dot_dimension_numbers<[1], [0], [0], [1], [0, 0, 1, 1], [], []>} : vector<512x128xbf16>, vector<128x128xbf16>, vector<512x128xf32> -> vector<512x128xf32>
    %c0_3 = arith.constant 0 : index
    %c0_4 = arith.constant 0 : index
    %3 = vector.load %arg3[%c0_3, %c0_4] : memref<1x128xf32, #tpu.memory_space<vmem>>, vector<1x128xf32>
    %4 = vector.broadcast %3 : vector<1x128xf32> to vector<512x128xf32>
    %5 = arith.addf %2, %4 : vector<512x128xf32>
    %cst_5 = arith.constant 0.000000e+00 : f32
    %6 = vector.broadcast %cst_5 : f32 to vector<512x128xf32>
    %7 = arith.maximumf %5, %6 : vector<512x128xf32>
    %8 = arith.truncf %7 : vector<512x128xf32> to vector<512x128xbf16>
    %c0_6 = arith.constant 0 : index
    %c0_7 = arith.constant 0 : index
    %9 = vector.load %arg4[%c0_6, %c0_7] : memref<512x128xbf16, #tpu.memory_space<vmem>>, vector<512x128xbf16>
    tpu.vector_store %arg4[%c0_6, %c0_7], %8 {strides = array<i32>} : memref<512x128xbf16, #tpu.memory_space<vmem>>, vector<512x128xbf16>,
    return
  }
  func.func @transform_0(%arg0: i32) -> (i32, i32) {
    %c0_i32 = arith.constant 0 : i32
    %c0_i32_0 = arith.constant 0 : i32
    return %arg0, %c0_i32 : i32, i32
  }
  func.func @transform_1(%arg0: i32) -> (i32, i32) {
    %c0_i32 = arith.constant 0 : i32
    %c0_i32_0 = arith.constant 0 : i32
    %c0_i32_1 = arith.constant 0 : i32
    return %c0_i32, %c0_i32_0 : i32, i32
  }
  func.func @transform_2(%arg0: i32) -> (i32, i32) {
    %c0_i32 = arith.constant 0 : i32
    %c0_i32_0 = arith.constant 0 : i32
    %c0_i32_1 = arith.constant 0 : i32
    return %c0_i32, %c0_i32_0 : i32, i32
  }
  func.func @transform_3(%arg0: i32) -> (i32, i32) {
    %c0_i32 = arith.constant 0 : i32
    %c0_i32_0 = arith.constant 0 : i32
    return %arg0, %c0_i32 : i32, i32
  }
}

module attributes {stable_mosaic.version = 11 : i64} {
  func.func @kernel(%arg0: i32, %arg1: memref<512x128xbf16, #tpu.memory_space<vmem>>, %arg2: memref<128x128xbf16, #tpu.memory_space<vmem>>, %arg3: memref<1x128xf32, #tpu.memory_space<vmem>>, %arg4: memref<512x128xbf16, #tpu.memory_space<vmem>>) attributes {dimension_semantics = [#tpu.dimension_semantics<parallel>], iteration_bounds = array<i64: 1>, scalar_prefetch = 0 : i64, scratch_operands = 0 : i64, tpu.core_type = #tpu.core_type<tc>, window_params = [{transform_indices = @transform_0, window_bounds = array<i64: 512, 128>}, {pipeline_mode = #tpu.pipeline_mode<synchronous>, transform_indices = @transform_1, window_bounds = array<i64: 128, 128>}, {pipeline_mode = #tpu.pipeline_mode<synchronous>, transform_indices = @transform_2, window_bounds = array<i64: 1, 128>}, {transform_indices = @transform_3, window_bounds = array<i64: 512, 128>}]} {
    %c0 = arith.constant 0 : index
    %c0_0 = arith.constant 0 : index
    %0 = vector.load %arg1[%c0, %c0_0] : memref<512x128xbf16, #tpu.memory_space<vmem>>, vector<512x128xbf16>
    %c0_1 = arith.constant 0 : index
    %c0_2 = arith.constant 0 : index
    %1 = vector.load %arg2[%c0_1, %c0_2] : memref<128x128xbf16, #tpu.memory_space<vmem>>, vector<128x128xbf16>
    %cst = arith.constant dense<0.000000e+00> : vector<512x128xf32>
    %2 = tpu.matmul %0, %1, %cst {dimension_numbers = #tpu.dot_dimension_numbers<[1], [0], [0], [1], [0, 0, 1, 1], [], []>} : vector<512x128xbf16>, vector<128x128xbf16>, vector<512x128xf32> -> vector<512x128xf32>
    %c0_3 = arith.constant 0 : index
    %c0_4 = arith.constant 0 : index
    %3 = vector.load %arg3[%c0_3, %c0_4] : memref<1x128xf32, #tpu.memory_space<vmem>>, vector<1x128xf32>
    %4 = vector.broadcast %3 : vector<1x128xf32> to vector<512x128xf32>
    %5 = arith.addf %2, %4 : vector<512x128xf32>
    %cst_5 = arith.constant 0.000000e+00 : f32
    %6 = vector.broadcast %cst_5 : f32 to vector<512x128xf32>
    %7 = arith.maximumf %5, %6 : vector<512x128xf32>
    %8 = arith.truncf %7 : vector<512x128xf32> to vector<512x128xbf16>
    %c0_6 = arith.constant 0 : index
    %c0_7 = arith.constant 0 : index
    %9 = vector.load %arg4[%c0_6, %c0_7] : memref<512x128xbf16, #tpu.memory_space<vmem>>, vector<512x128xbf16>
    tpu.vector_store %arg4[%c0_6, %c0_7], %8 {strides = array<i32>} : memref<512x128xbf16, #tpu.memory_space<vmem>>, vector<512x128xbf16>,
    return
  }
  func.func @transform_0(%arg0: i32) -> (i32, i32) {
    %c0_i32 = arith.constant 0 : i32
    %c0_i32_0 = arith.constant 0 : i32
    return %arg0, %c0_i32 : i32, i32
  }
  func.func @transform_1(%arg0: i32) -> (i32, i32) {
    %c0_i32 = arith.constant 0 : i32
    %c0_i32_0 = arith.constant 0 : i32
    %c0_i32_1 = arith.constant 0 : i32
    return %c0_i32, %c0_i32_0 : i32, i32
  }
  func.func @transform_2(%arg0: i32) -> (i32, i32) {
    %c0_i32 = arith.constant 0 : i32
    %c0_i32_0 = arith.constant 0 : i32
    %c0_i32_1 = arith.constant 0 : i32
    return %c0_i32, %c0_i32_0 : i32, i32
  }
  func.func @transform_3(%arg0: i32) -> (i32, i32) {
    %c0_i32 = arith.constant 0 : i32
    %c0_i32_0 = arith.constant 0 : i32
    return %arg0, %c0_i32 : i32, i32
  }
}

module attributes {stable_mosaic.version = 11 : i64} {
  func.func @kernel(%arg0: i32, %arg1: memref<128x128xbf16, #tpu.memory_space<vmem>>, %arg2: memref<128x128xbf16, #tpu.memory_space<vmem>>, %arg3: memref<1x128xf32, #tpu.memory_space<vmem>>, %arg4: memref<128x128xbf16, #tpu.memory_space<vmem>>) attributes {dimension_semantics = [#tpu.dimension_semantics<parallel>], iteration_bounds = array<i64: 1>, scalar_prefetch = 0 : i64, scratch_operands = 0 : i64, tpu.core_type = #tpu.core_type<tc>, window_params = [{transform_indices = @transform_0, window_bounds = array<i64: 128, 128>}, {pipeline_mode = #tpu.pipeline_mode<synchronous>, transform_indices = @transform_1, window_bounds = array<i64: 128, 128>}, {pipeline_mode = #tpu.pipeline_mode<synchronous>, transform_indices = @transform_2, window_bounds = array<i64: 1, 128>}, {transform_indices = @transform_3, window_bounds = array<i64: 128, 128>}]} {
    %c0 = arith.constant 0 : index
    %c0_0 = arith.constant 0 : index
    %0 = vector.load %arg1[%c0, %c0_0] : memref<128x128xbf16, #tpu.memory_space<vmem>>, vector<128x128xbf16>
    %c0_1 = arith.constant 0 : index
    %c0_2 = arith.constant 0 : index
    %1 = vector.load %arg2[%c0_1, %c0_2] : memref<128x128xbf16, #tpu.memory_space<vmem>>, vector<128x128xbf16>
    %cst = arith.constant dense<0.000000e+00> : vector<128x128xf32>
    %2 = tpu.matmul %0, %1, %cst {dimension_numbers = #tpu.dot_dimension_numbers<[1], [0], [0], [1], [0, 0, 1, 1], [], []>} : vector<128x128xbf16>, vector<128x128xbf16>, vector<128x128xf32> -> vector<128x128xf32>
    %c0_3 = arith.constant 0 : index
    %c0_4 = arith.constant 0 : index
    %3 = vector.load %arg3[%c0_3, %c0_4] : memref<1x128xf32, #tpu.memory_space<vmem>>, vector<1x128xf32>
    %4 = vector.broadcast %3 : vector<1x128xf32> to vector<128x128xf32>
    %5 = arith.addf %2, %4 : vector<128x128xf32>
    %cst_5 = arith.constant 0.000000e+00 : f32
    %6 = vector.broadcast %cst_5 : f32 to vector<128x128xf32>
    %7 = arith.maximumf %5, %6 : vector<128x128xf32>
    %8 = arith.truncf %7 : vector<128x128xf32> to vector<128x128xbf16>
    %c0_6 = arith.constant 0 : index
    %c0_7 = arith.constant 0 : index
    %9 = vector.load %arg4[%c0_6, %c0_7] : memref<128x128xbf16, #tpu.memory_space<vmem>>, vector<128x128xbf16>
    tpu.vector_store %arg4[%c0_6, %c0_7], %8 {strides = array<i32>} : memref<128x128xbf16, #tpu.memory_space<vmem>>, vector<128x128xbf16>,
    return
  }
  func.func @transform_0(%arg0: i32) -> (i32, i32) {
    %c0_i32 = arith.constant 0 : i32
    %c0_i32_0 = arith.constant 0 : i32
    return %arg0, %c0_i32 : i32, i32
  }
  func.func @transform_1(%arg0: i32) -> (i32, i32) {
    %c0_i32 = arith.constant 0 : i32
    %c0_i32_0 = arith.constant 0 : i32
    %c0_i32_1 = arith.constant 0 : i32
    return %c0_i32, %c0_i32_0 : i32, i32
  }
  func.func @transform_2(%arg0: i32) -> (i32, i32) {
    %c0_i32 = arith.constant 0 : i32
    %c0_i32_0 = arith.constant 0 : i32
    %c0_i32_1 = arith.constant 0 : i32
    return %c0_i32, %c0_i32_0 : i32, i32
  }
  func.func @transform_3(%arg0: i32) -> (i32, i32) {
    %c0_i32 = arith.constant 0 : i32
    %c0_i32_0 = arith.constant 0 : i32
    return %arg0, %c0_i32 : i32, i32
  }
}

module attributes {stable_mosaic.version = 11 : i64} {
  func.func @kernel(%arg0: i32, %arg1: memref<32x256xbf16, #tpu.memory_space<vmem>>, %arg2: memref<256x128xbf16, #tpu.memory_space<vmem>>, %arg3: memref<1x128xf32, #tpu.memory_space<vmem>>, %arg4: memref<32x128xbf16, #tpu.memory_space<vmem>>) attributes {dimension_semantics = [#tpu.dimension_semantics<parallel>], iteration_bounds = array<i64: 1>, scalar_prefetch = 0 : i64, scratch_operands = 0 : i64, tpu.core_type = #tpu.core_type<tc>, window_params = [{transform_indices = @transform_0, window_bounds = array<i64: 32, 256>}, {pipeline_mode = #tpu.pipeline_mode<synchronous>, transform_indices = @transform_1, window_bounds = array<i64: 256, 128>}, {pipeline_mode = #tpu.pipeline_mode<synchronous>, transform_indices = @transform_2, window_bounds = array<i64: 1, 128>}, {transform_indices = @transform_3, window_bounds = array<i64: 32, 128>}]} {
    %c0 = arith.constant 0 : index
    %c0_0 = arith.constant 0 : index
    %0 = vector.load %arg1[%c0, %c0_0] : memref<32x256xbf16, #tpu.memory_space<vmem>>, vector<32x256xbf16>
    %c0_1 = arith.constant 0 : index
    %c0_2 = arith.constant 0 : index
    %1 = vector.load %arg2[%c0_1, %c0_2] : memref<256x128xbf16, #tpu.memory_space<vmem>>, vector<256x128xbf16>
    %cst = arith.constant dense<0.000000e+00> : vector<32x128xf32>
    %2 = tpu.matmul %0, %1, %cst {dimension_numbers = #tpu.dot_dimension_numbers<[1], [0], [0], [1], [0, 0, 1, 1], [], []>} : vector<32x256xbf16>, vector<256x128xbf16>, vector<32x128xf32> -> vector<32x128xf32>
    %c0_3 = arith.constant 0 : index
    %c0_4 = arith.constant 0 : index
    %3 = vector.load %arg3[%c0_3, %c0_4] : memref<1x128xf32, #tpu.memory_space<vmem>>, vector<1x128xf32>
    %4 = vector.broadcast %3 : vector<1x128xf32> to vector<32x128xf32>
    %5 = arith.addf %2, %4 : vector<32x128xf32>
    %cst_5 = arith.constant 0.000000e+00 : f32
    %6 = vector.broadcast %cst_5 : f32 to vector<32x128xf32>
    %7 = arith.maximumf %5, %6 : vector<32x128xf32>
    %8 = arith.truncf %7 : vector<32x128xf32> to vector<32x128xbf16>
    %c0_6 = arith.constant 0 : index
    %c0_7 = arith.constant 0 : index
    %9 = vector.load %arg4[%c0_6, %c0_7] : memref<32x128xbf16, #tpu.memory_space<vmem>>, vector<32x128xbf16>
    tpu.vector_store %arg4[%c0_6, %c0_7], %8 {strides = array<i32>} : memref<32x128xbf16, #tpu.memory_space<vmem>>, vector<32x128xbf16>,
    return
  }
  func.func @transform_0(%arg0: i32) -> (i32, i32) {
    %c0_i32 = arith.constant 0 : i32
    %c0_i32_0 = arith.constant 0 : i32
    return %arg0, %c0_i32 : i32, i32
  }
  func.func @transform_1(%arg0: i32) -> (i32, i32) {
    %c0_i32 = arith.constant 0 : i32
    %c0_i32_0 = arith.constant 0 : i32
    %c0_i32_1 = arith.constant 0 : i32
    return %c0_i32, %c0_i32_0 : i32, i32
  }
  func.func @transform_2(%arg0: i32) -> (i32, i32) {
    %c0_i32 = arith.constant 0 : i32
    %c0_i32_0 = arith.constant 0 : i32
    %c0_i32_1 = arith.constant 0 : i32
    return %c0_i32, %c0_i32_0 : i32, i32
  }
  func.func @transform_3(%arg0: i32) -> (i32, i32) {
    %c0_i32 = arith.constant 0 : i32
    %c0_i32_0 = arith.constant 0 : i32
    return %arg0, %c0_i32 : i32, i32
  }
}

module attributes {stable_mosaic.version = 11 : i64} {
  func.func @kernel(%arg0: i32, %arg1: memref<16x384xbf16, #tpu.memory_space<vmem>>, %arg2: memref<384x128xbf16, #tpu.memory_space<vmem>>, %arg3: memref<1x128xf32, #tpu.memory_space<vmem>>, %arg4: memref<16x128xbf16, #tpu.memory_space<vmem>>) attributes {dimension_semantics = [#tpu.dimension_semantics<parallel>], iteration_bounds = array<i64: 1>, scalar_prefetch = 0 : i64, scratch_operands = 0 : i64, tpu.core_type = #tpu.core_type<tc>, window_params = [{transform_indices = @transform_0, window_bounds = array<i64: 16, 384>}, {pipeline_mode = #tpu.pipeline_mode<synchronous>, transform_indices = @transform_1, window_bounds = array<i64: 384, 128>}, {pipeline_mode = #tpu.pipeline_mode<synchronous>, transform_indices = @transform_2, window_bounds = array<i64: 1, 128>}, {transform_indices = @transform_3, window_bounds = array<i64: 16, 128>}]} {
    %c0 = arith.constant 0 : index
    %c0_0 = arith.constant 0 : index
    %0 = vector.load %arg1[%c0, %c0_0] : memref<16x384xbf16, #tpu.memory_space<vmem>>, vector<16x384xbf16>
    %c0_1 = arith.constant 0 : index
    %c0_2 = arith.constant 0 : index
    %1 = vector.load %arg2[%c0_1, %c0_2] : memref<384x128xbf16, #tpu.memory_space<vmem>>, vector<384x128xbf16>
    %cst = arith.constant dense<0.000000e+00> : vector<16x128xf32>
    %2 = tpu.matmul %0, %1, %cst {dimension_numbers = #tpu.dot_dimension_numbers<[1], [0], [0], [1], [0, 0, 1, 1], [], []>} : vector<16x384xbf16>, vector<384x128xbf16>, vector<16x128xf32> -> vector<16x128xf32>
    %c0_3 = arith.constant 0 : index
    %c0_4 = arith.constant 0 : index
    %3 = vector.load %arg3[%c0_3, %c0_4] : memref<1x128xf32, #tpu.memory_space<vmem>>, vector<1x128xf32>
    %4 = vector.broadcast %3 : vector<1x128xf32> to vector<16x128xf32>
    %5 = arith.addf %2, %4 : vector<16x128xf32>
    %cst_5 = arith.constant 0.000000e+00 : f32
    %6 = vector.broadcast %cst_5 : f32 to vector<16x128xf32>
    %7 = arith.maximumf %5, %6 : vector<16x128xf32>
    %8 = arith.truncf %7 : vector<16x128xf32> to vector<16x128xbf16>
    %c0_6 = arith.constant 0 : index
    %c0_7 = arith.constant 0 : index
    %9 = vector.load %arg4[%c0_6, %c0_7] : memref<16x128xbf16, #tpu.memory_space<vmem>>, vector<16x128xbf16>
    tpu.vector_store %arg4[%c0_6, %c0_7], %8 {strides = array<i32>} : memref<16x128xbf16, #tpu.memory_space<vmem>>, vector<16x128xbf16>,
    return
  }
  func.func @transform_0(%arg0: i32) -> (i32, i32) {
    %c0_i32 = arith.constant 0 : i32
    %c0_i32_0 = arith.constant 0 : i32
    return %arg0, %c0_i32 : i32, i32
  }
  func.func @transform_1(%arg0: i32) -> (i32, i32) {
    %c0_i32 = arith.constant 0 : i32
    %c0_i32_0 = arith.constant 0 : i32
    %c0_i32_1 = arith.constant 0 : i32
    return %c0_i32, %c0_i32_0 : i32, i32
  }
  func.func @transform_2(%arg0: i32) -> (i32, i32) {
    %c0_i32 = arith.constant 0 : i32
    %c0_i32_0 = arith.constant 0 : i32
    %c0_i32_1 = arith.constant 0 : i32
    return %c0_i32, %c0_i32_0 : i32, i32
  }
  func.func @transform_3(%arg0: i32) -> (i32, i32) {
    %c0_i32 = arith.constant 0 : i32
    %c0_i32_0 = arith.constant 0 : i32
    return %arg0, %c0_i32 : i32, i32
  }
}

</mosaic_0001>

<bundles_post_ra>
// kernel: _forward_impl.5
= control target key start
LH: loop header
LB: loop body
LE: loop exit
PB: predicated region body
PF: predicated region fallthrough
CT: control target
= control target key end

     0   :  { %s1814_s12 = smov 0   ;;  %s1999_s0 = inlined_call_operand.vmem [shape: bf16[2048,128], index: 0, kind: input, shape index: {}]   ;;  %s2000_s1 = inlined_call_operand.vmem [shape: bf16[128,128], index: 1, kind: input, shape index: {}]   ;;  %s2001_s2 = inlined_call_operand.vmem [shape: f32[1,128], index: 2, kind: input, shape index: {}]   ;;  %s2002_s3 = inlined_call_operand.vmem [shape: bf16[2048,128], index: 3, kind: output, shape index: {}]  }
   0x1 LB: > { %s1231_s13 = sadd.s32 4294967295, %s1792_s12   ;;  %p1235_p0 = scmp.ge.s32.totalorder %s1792_s12, 1  ;;  %s1792_s12 = sphi %s1814_s12, %s13_s12  }
   0x2   : > { %p138_p1 = scmp.lt.s32.totalorder %s1792_s12, 5 }
   0x4   : > { %p139_p2 = pnand %p1235_p0, %p138_p1 }
   0x5   : > { %v1746_v0 = vld [vmem:[%s2000_s1] sm:$0xff] (!%p139_p2)   ;;  %s1236_s16 = sshll.u32 (!%p139_p2), %s1231_s13, 6  ;;  %v1747_v1 = vld [vmem:[%s2000_s1 + $0x8] sm:$0xff] (!%p139_p2)   ;;  %v1748_v2 = vld [vmem:[%s2000_s1 + $0x10] sm:$0xff] (!%p139_p2)  }
   0x6   : > { %142 = sbr.rel (%p139_p2) target bundleno = 316 (0x13c), region = 32  ;;  %p163_p3 = scmp.lt.s32.totalorder (!%p139_p2), %s1236_s16, 255  ;;  %1642 = vmatprep.subr.bf16.mxu0 (!%p139_p2), %v1746_v0  ;;  %1722 = vmatprep.subr.bf16.mxu1 (!%p139_p2), %v1746_v0  ;;  %v1749_v3 = vld [vmem:[%s2000_s1 + $0x18] sm:$0xff] (!%p139_p2)   ;;  %v1750_v6 = vld [vmem:[%s2000_s1 + $0x20] sm:$0xff] (!%p139_p2)   ;;  %v1751_v7 = vld [vmem:[%s2000_s1 + $0x28] sm:$0xff] (!%p139_p2)  }
   0x7   : > { %1643 = vmatpush3.bf16.msra.mxu0 (!%p139_p2), %v1746_v0  ;;  %1730 = vmatpush3.bf16.msra.mxu1 (!%p139_p2), %v1746_v0  ;;  %v1752_v8 = vld [vmem:[%s2000_s1 + $0x30] sm:$0xff] (!%p139_p2)   ;;  %v1753_v9 = vld [vmem:[%s2000_s1 + $0x38] sm:$0xff] (!%p139_p2)   ;;  %v1891_v40 = vld [vmem:[%s2001_s2] ss:$0 sm:$0xff] (!%p139_p2) }
   0x8   : > { %1644 = vmatprep.subr.bf16.mxu0 (!%p139_p2), %v1747_v1  ;;  %1723 = vmatprep.subr.bf16.mxu1 (!%p139_p2), %v1747_v1 }
   0xb   : > { %1645 = vmatpush3.bf16.msra.mxu0 (!%p139_p2), %v1747_v1  ;;  %1731 = vmatpush3.bf16.msra.mxu1 (!%p139_p2), %v1747_v1 }
   0xc   : > { %1646 = vmatprep.subr.bf16.mxu0 (!%p139_p2), %v1748_v2  ;;  %1724 = vmatprep.subr.bf16.mxu1 (!%p139_p2), %v1748_v2 }
   0xd   : > { %s2004_s16 = smov (!%p163_p3, %s1236_s16), 255 }
   0xe   : > { %s1237_s21 = sshll.u32 %s2004_s16, 2 }
   0xf   : > { %s1839_s24 = scalar_lea.vmem %s1999_s0, %s1237_s21  ;;  %1647 = vmatpush3.bf16.msra.mxu0 %v1748_v2  ;;  %1732 = vmatpush3.bf16.msra.mxu1 %v1748_v2  ;;  %s1906_s13 = scalar_lea.vmem %s2002_s3, %s1237_s21 }
  0x10   : > { %v1754_v4 = vld [vmem:[%s1839_s24] sm:$0xff]   ;;  %1648 = vmatprep.subr.bf16.mxu0 %v1749_v3  ;;  %1725 = vmatprep.subr.bf16.mxu1 %v1749_v3  ;;  %v1756_v10 = vld [vmem:[%s1839_s24 + $0x8] sm:$0xff]   ;;  %v1758_v12 = vld [vmem:[%s1839_s24 + $0x10] sm:$0xff]  }
  0x11   : > { %v1755_v5 = vld [vmem:[%s1839_s24 + $0x80] sm:$0xff]   ;;  %1658 = vmatprep.mubr.bf16.mxu0 %v1754_v4  ;;  %v1757_v11 = vld [vmem:[%s1839_s24 + $0x88] sm:$0xff]   ;;  %v1759_v13 = vld [vmem:[%s1839_s24 + $0x90] sm:$0xff]  }
  0x12   : > { %1690 = vmatprep.mubr.bf16.mxu1 %v1755_v5  ;;  %v1760_v14 = vld [vmem:[%s1839_s24 + $0x18] sm:$0xff]   ;;  %v1762_v16 = vld [vmem:[%s1839_s24 + $0x20] sm:$0xff]   ;;  %v1764_v18 = vld [vmem:[%s1839_s24 + $0x28] sm:$0xff]  }
  0x13   : > { %1649 = vmatpush3.bf16.msra.mxu0 %v1749_v3  ;;  %1733 = vmatpush3.bf16.msra.mxu1 %v1749_v3  ;;  %v1761_v15 = vld [vmem:[%s1839_s24 + $0x98] sm:$0xff]   ;;  %v1763_v17 = vld [vmem:[%s1839_s24 + $0xa0] sm:$0xff]   ;;  %v1765_v19 = vld [vmem:[%s1839_s24 + $0xa8] sm:$0xff]  }
  0x14   : > { %1650 = vmatprep.subr.bf16.mxu0 %v1750_v6  ;;  %1726 = vmatprep.subr.bf16.mxu1 %v1750_v6  ;;  %v1766_v20 = vld [vmem:[%s1839_s24 + $0x30] sm:$0xff]   ;;  %v1768_v22 = vld [vmem:[%s1839_s24 + $0x38] sm:$0xff]   ;;  %v1770_v24 = vld [vmem:[%s1839_s24 + $0x40] sm:$0xff]  }
  0x15   : > { %v1767_v21 = vld [vmem:[%s1839_s24 + $0xb0] sm:$0xff]   ;;  %v1769_v23 = vld [vmem:[%s1839_s24 + $0xb8] sm:$0xff]   ;;  %v1771_v25 = vld [vmem:[%s1839_s24 + $0xc0] sm:$0xff]  }
  0x16   : > { %v1772_v26 = vld [vmem:[%s1839_s24 + $0x48] sm:$0xff]   ;;  %v1774_v28 = vld [vmem:[%s1839_s24 + $0x50] sm:$0xff]   ;;  %v1776_v30 = vld [vmem:[%s1839_s24 + $0x58] sm:$0xff]  }
  0x17   : > { %1651 = vmatpush3.bf16.msra.mxu0 %v1750_v6  ;;  %1734 = vmatpush3.bf16.msra.mxu1 %v1750_v6  ;;  %v1773_v27 = vld [vmem:[%s1839_s24 + $0xc8] sm:$0xff]   ;;  %v1775_v29 = vld [vmem:[%s1839_s24 + $0xd0] sm:$0xff]   ;;  %v1777_v31 = vld [vmem:[%s1839_s24 + $0xd8] sm:$0xff]  }
  0x18   : > { %1652 = vmatprep.subr.bf16.mxu0 %v1751_v7  ;;  %1727 = vmatprep.subr.bf16.mxu1 %v1751_v7  ;;  %v1778_v32 = vld [vmem:[%s1839_s24 + $0x60] sm:$0xff]   ;;  %v1780_v34 = vld [vmem:[%s1839_s24 + $0x68] sm:$0xff]   ;;  %v1782_v36 = vld [vmem:[%s1839_s24 + $0x70] sm:$0xff]  }
  0x19   : > { %v1779_v33 = vld [vmem:[%s1839_s24 + $0xe0] sm:$0xff]   ;;  %v1781_v35 = vld [vmem:[%s1839_s24 + $0xe8] sm:$0xff]   ;;  %v1783_v37 = vld [vmem:[%s1839_s24 + $0xf0] sm:$0xff]  }
  0x1a   : > { %v1784_v38 = vld [vmem:[%s1839_s24 + $0x78] sm:$0xff]  }
  0x1b   : > { %1653 = vmatpush3.bf16.msra.mxu0 %v1751_v7  ;;  %1735 = vmatpush3.bf16.msra.mxu1 %v1751_v7  ;;  %v1785_v39 = vld [vmem:[%s1839_s24 + $0xf8] sm:$0xff]  }
  0x1c   : > { %1654 = vmatprep.subr.bf16.mxu0 %v1752_v8  ;;  %1728 = vmatprep.subr.bf16.mxu1 %v1752_v8 }
  0x1f   : > { %1655 = vmatpush3.bf16.msra.mxu0 %v1752_v8  ;;  %1736 = vmatpush3.bf16.msra.mxu1 %v1752_v8 }
  0x20   : > { %1656 = vmatprep.subr.bf16.mxu0 %v1753_v9  ;;  %1729 = vmatprep.subr.bf16.mxu1 %v1753_v9 }
  0x23   : > { %1657 = vmatpush3.bf16.msra.mxu0 %v1753_v9  ;;  %1737 = vmatpush3.bf16.msra.mxu1 %v1753_v9 }
  0x26   : > { %1659 = vmatmul.mubr.bf16.vlgmr.msra.gmra.mrb[0].mxu0 %v1756_v10  ;;  %1691 = vmatmul.mubr.bf16.vlgmr.msra.gmra.mrb[0].mxu1 %v1757_v11 }
  0x27   : > { %1662 = vmatprep.mubr.bf16.mxu0 %v1758_v12  ;;  %1694 = vmatprep.mubr.bf16.mxu1 %v1759_v13 }
  0x2e   : > { %1663 = vmatmul.mubr.bf16.gmra.mrb[4].mxu0 %v1760_v14  ;;  %1695 = vmatmul.mubr.bf16.gmra.mrb[4].mxu1 %v1761_v15 }
  0x2f   : > { %1666 = vmatprep.mubr.bf16.mxu0 %v1762_v16  ;;  %1698 = vmatprep.mubr.bf16.mxu1 %v1763_v17 }
  0x36   : > { %1667 = vmatmul.mubr.bf16.gmra.mrb[8].mxu0 %v1764_v18  ;;  %1699 = vmatmul.mubr.bf16.gmra.mrb[8].mxu1 %v1765_v19 }
  0x37   : > { %1670 = vmatprep.mubr.bf16.mxu0 %v1766_v20  ;;  %1702 = vmatprep.mubr.bf16.mxu1 %v1767_v21 }
  0x3e   : > { %1671 = vmatmul.mubr.bf16.gmra.mrb[12].mxu0 %v1768_v22  ;;  %1703 = vmatmul.mubr.bf16.gmra.mrb[12].mxu1 %v1769_v23 }
  0x3f   : > { %1674 = vmatprep.mubr.bf16.mxu0 %v1770_v24  ;;  %1706 = vmatprep.mubr.bf16.mxu1 %v1771_v25 }
  0x46   : > { %1675 = vmatmul.mubr.bf16.gmra.mrb[16].mxu0 %v1772_v26  ;;  %1707 = vmatmul.mubr.bf16.gmra.mrb[16].mxu1 %v1773_v27 }
  0x47   : > { %1678 = vmatprep.mubr.bf16.mxu0 %v1774_v28  ;;  %1710 = vmatprep.mubr.bf16.mxu1 %v1775_v29 }
  0x4e   : > { %1679 = vmatmul.mubr.bf16.gmra.mrb[20].mxu0 %v1776_v30  ;;  %1711 = vmatmul.mubr.bf16.gmra.mrb[20].mxu1 %v1777_v31 }
  0x4f   : > { %1682 = vmatprep.mubr.bf16.mxu0 %v1778_v32  ;;  %1714 = vmatprep.mubr.bf16.mxu1 %v1779_v33 }
  0x56   : > { %1683 = vmatmul.mubr.bf16.gmra.mrb[24].mxu0 %v1780_v34  ;;  %1715 = vmatmul.mubr.bf16.gmra.mrb[24].mxu1 %v1781_v35 }
  0x57   : > { %1686 = vmatprep.mubr.bf16.mxu0 %v1782_v36  ;;  %1718 = vmatprep.mubr.bf16.mxu1 %v1783_v37 }
  0x5e   : > { %1687 = vmatmul.mubr.bf16.gmra.mrb[28].mxu0 %v1784_v38  ;;  %1719 = vmatmul.mubr.bf16.gmra.mrb[28].mxu1 %v1785_v39 }
  0xf9   : > { %v1660_v41 = vpop.f32.mrb[0].mxu0  ;;  %v1692_v42 = vpop.f32.mrb[0].mxu1 }
  0xfa   : > { %v545_v43 = vadd.f32 %v1660_v41, %v1891_v40  ;;  %v673_v44 = vadd.f32 %v1692_v42, %v1891_v40  ;;  %v536_v45 = vpop.f32.mrb[1].mxu0  ;;  %v664_v46 = vpop.f32.mrb[1].mxu1 }
  0xfb   : > { %v537_v47 = vadd.f32 %v1891_v40, %v536_v45  ;;  %v665_v48 = vadd.f32 %v1891_v40, %v664_v46  ;;  %v1661_v49 = vpop.f32.mrb[2].mxu0  ;;  %v1693_v50 = vpop.f32.mrb[2].mxu1 }
  0xfc   : > { %v548_v51 = vadd.f32 %v1661_v49, %v1891_v40  ;;  %v676_v52 = vadd.f32 %v1693_v50, %v1891_v40  ;;  %v539_v53 = vpop.f32.mrb[3].mxu0  ;;  %v667_v54 = vpop.f32.mrb[3].mxu1  ;;  %v793_v57 = vmax.f32 %v545_v43, 0.0  ;;  %v825_v58 = vmax.f32 %v673_v44, 0.0 }
  0xfd   : > { %v540_v55 = vadd.f32 %v1891_v40, %v539_v53  ;;  %v668_v56 = vadd.f32 %v1891_v40, %v667_v54  ;;  %v791_v61 = vmax.f32 %v537_v47, 0.0  ;;  %v823_v62 = vmax.f32 %v665_v48, 0.0 }
  0xfe   : > { %v794_v59 = vmax.f32 %v548_v51, 0.0  ;;  %v826_v60 = vmax.f32 %v676_v52, 0.0 }
  0xff   : > { %v792_v63 = vmax.f32 %v540_v55, 0.0  ;;  %v824_v0 = vmax.f32 %v668_v56, 0.0 }
 0x100   : > { %v1419_v1 = vpack.c.bf16 %v794_v59, %v793_v57  ;;  %v1499_v2 = vpack.c.bf16 %v826_v60, %v825_v58 }
 0x101   : > { %v1414_v3 = vpack.c.bf16 %v792_v63, %v791_v61  ;;  %v1494_v4 = vpack.c.bf16 %v824_v0, %v823_v62  ;;  %v1664_v5 = vpop.f32.mrb[4].mxu0  ;;  %v1696_v6 = vpop.f32.mrb[4].mxu1 }
 0x102   : > { %1571 = vst [vmem:[%s1906_s13 + $0x8] sm:$0xff] %v1419_v1   ;;  %1587 = vst [vmem:[%s1906_s13 + $0x88] sm:$0xff] %v1499_v2   ;;  %v561_v7 = vadd.f32 %v1664_v5, %v1891_v40  ;;  %v689_v8 = vadd.f32 %v1696_v6, %v1891_v40  ;;  %v552_v9 = vpop.f32.mrb[5].mxu0  ;;  %v680_v10 = vpop.f32.mrb[5].mxu1 }
 0x103   : > { %1415 = vst [vmem:[%s1906_s13] sm:$0xff] %v1414_v3   ;;  %1586 = vst [vmem:[%s1906_s13 + $0x80] sm:$0xff] %v1494_v4   ;;  %v553_v11 = vadd.f32 %v1891_v40, %v552_v9  ;;  %v681_v12 = vadd.f32 %v1891_v40, %v680_v10  ;;  %v1665_v13 = vpop.f32.mrb[6].mxu0  ;;  %v1697_v14 = vpop.f32.mrb[6].mxu1 }
 0x104   : > { %v564_v15 = vadd.f32 %v1665_v13, %v1891_v40  ;;  %v692_v16 = vadd.f32 %v1697_v14, %v1891_v40  ;;  %v555_v17 = vpop.f32.mrb[7].mxu0  ;;  %v683_v18 = vpop.f32.mrb[7].mxu1  ;;  %v797_v21 = vmax.f32 %v561_v7, 0.0  ;;  %v829_v22 = vmax.f32 %v689_v8, 0.0 }
 0x105   : > { %v556_v19 = vadd.f32 %v1891_v40, %v555_v17  ;;  %v684_v20 = vadd.f32 %v1891_v40, %v683_v18  ;;  %v795_v25 = vmax.f32 %v553_v11, 0.0  ;;  %v827_v26 = vmax.f32 %v681_v12, 0.0 }
 0x106   : > { %v798_v23 = vmax.f32 %v564_v15, 0.0  ;;  %v830_v24 = vmax.f32 %v692_v16, 0.0 }
 0x107   : > { %v796_v27 = vmax.f32 %v556_v19, 0.0  ;;  %v828_v28 = vmax.f32 %v684_v20, 0.0 }
 0x108   : > { %v1429_v29 = vpack.c.bf16 %v798_v23, %v797_v21  ;;  %v1509_v30 = vpack.c.bf16 %v830_v24, %v829_v22 }
 0x109   : > { %v1424_v31 = vpack.c.bf16 %v796_v27, %v795_v25  ;;  %v1504_v32 = vpack.c.bf16 %v828_v28, %v827_v26  ;;  %v1668_v33 = vpop.f32.mrb[8].mxu0  ;;  %v1700_v34 = vpop.f32.mrb[8].mxu1 }
 0x10a   : > { %1573 = vst [vmem:[%s1906_s13 + $0x18] sm:$0xff] %v1429_v29   ;;  %1589 = vst [vmem:[%s1906_s13 + $0x98] sm:$0xff] %v1509_v30   ;;  %v577_v35 = vadd.f32 %v1668_v33, %v1891_v40  ;;  %v705_v36 = vadd.f32 %v1700_v34, %v1891_v40  ;;  %v568_v37 = vpop.f32.mrb[9].mxu0  ;;  %v696_v38 = vpop.f32.mrb[9].mxu1 }
 0x10b   : > { %1572 = vst [vmem:[%s1906_s13 + $0x10] sm:$0xff] %v1424_v31   ;;  %1588 = vst [vmem:[%s1906_s13 + $0x90] sm:$0xff] %v1504_v32   ;;  %v569_v39 = vadd.f32 %v1891_v40, %v568_v37  ;;  %v697_v41 = vadd.f32 %v1891_v40, %v696_v38  ;;  %v1669_v42 = vpop.f32.mrb[10].mxu0  ;;  %v1701_v43 = vpop.f32.mrb[10].mxu1 }
 0x10c   : > { %v580_v44 = vadd.f32 %v1669_v42, %v1891_v40  ;;  %v708_v45 = vadd.f32 %v1701_v43, %v1891_v40  ;;  %v571_v46 = vpop.f32.mrb[11].mxu0  ;;  %v699_v47 = vpop.f32.mrb[11].mxu1  ;;  %v801_v50 = vmax.f32 %v577_v35, 0.0  ;;  %v833_v51 = vmax.f32 %v705_v36, 0.0 }
 0x10d   : > { %v572_v48 = vadd.f32 %v1891_v40, %v571_v46  ;;  %v700_v49 = vadd.f32 %v1891_v40, %v699_v47  ;;  %v799_v54 = vmax.f32 %v569_v39, 0.0  ;;  %v831_v55 = vmax.f32 %v697_v41, 0.0 }
 0x10e   : > { %v802_v52 = vmax.f32 %v580_v44, 0.0  ;;  %v834_v53 = vmax.f32 %v708_v45, 0.0 }
 0x10f   : > { %v800_v56 = vmax.f32 %v572_v48, 0.0  ;;  %v832_v57 = vmax.f32 %v700_v49, 0.0 }
 0x110   : > { %v1439_v58 = vpack.c.bf16 %v802_v52, %v801_v50  ;;  %v1519_v59 = vpack.c.bf16 %v834_v53, %v833_v51 }
 0x111   : > { %v1434_v60 = vpack.c.bf16 %v800_v56, %v799_v54  ;;  %v1514_v61 = vpack.c.bf16 %v832_v57, %v831_v55  ;;  %v1672_v62 = vpop.f32.mrb[12].mxu0  ;;  %v1704_v63 = vpop.f32.mrb[12].mxu1 }
 0x112   : > { %1575 = vst [vmem:[%s1906_s13 + $0x28] sm:$0xff] %v1439_v58   ;;  %1591 = vst [vmem:[%s1906_s13 + $0xa8] sm:$0xff] %v1519_v59   ;;  %v593_v0 = vadd.f32 %v1672_v62, %v1891_v40  ;;  %v721_v1 = vadd.f32 %v1704_v63, %v1891_v40  ;;  %v584_v2 = vpop.f32.mrb[13].mxu0  ;;  %v712_v3 = vpop.f32.mrb[13].mxu1 }
 0x113   : > { %1574 = vst [vmem:[%s1906_s13 + $0x20] sm:$0xff] %v1434_v60   ;;  %1590 = vst [vmem:[%s1906_s13 + $0xa0] sm:$0xff] %v1514_v61   ;;  %v585_v4 = vadd.f32 %v1891_v40, %v584_v2  ;;  %v713_v5 = vadd.f32 %v1891_v40, %v712_v3  ;;  %v1673_v6 = vpop.f32.mrb[14].mxu0  ;;  %v1705_v7 = vpop.f32.mrb[14].mxu1 }
 0x114   : > { %v596_v8 = vadd.f32 %v1673_v6, %v1891_v40  ;;  %v724_v9 = vadd.f32 %v1705_v7, %v1891_v40  ;;  %v587_v10 = vpop.f32.mrb[15].mxu0  ;;  %v715_v11 = vpop.f32.mrb[15].mxu1  ;;  %v805_v14 = vmax.f32 %v593_v0, 0.0  ;;  %v837_v15 = vmax.f32 %v721_v1, 0.0 }
 0x115   : > { %v588_v12 = vadd.f32 %v1891_v40, %v587_v10  ;;  %v716_v13 = vadd.f32 %v1891_v40, %v715_v11  ;;  %v803_v18 = vmax.f32 %v585_v4, 0.0  ;;  %v835_v19 = vmax.f32 %v713_v5, 0.0 }
 0x116   : > { %v806_v16 = vmax.f32 %v596_v8, 0.0  ;;  %v838_v17 = vmax.f32 %v724_v9, 0.0 }
 0x117   : > { %v804_v20 = vmax.f32 %v588_v12, 0.0  ;;  %v836_v21 = vmax.f32 %v716_v13, 0.0 }
 0x118   : > { %v1449_v22 = vpack.c.bf16 %v806_v16, %v805_v14  ;;  %v1529_v23 = vpack.c.bf16 %v838_v17, %v837_v15 }
 0x119   : > { %v1444_v24 = vpack.c.bf16 %v804_v20, %v803_v18  ;;  %v1524_v25 = vpack.c.bf16 %v836_v21, %v835_v19  ;;  %v1676_v26 = vpop.f32.mrb[16].mxu0  ;;  %v1708_v27 = vpop.f32.mrb[16].mxu1 }
 0x11a   : > { %1577 = vst [vmem:[%s1906_s13 + $0x38] sm:$0xff] %v1449_v22   ;;  %1593 = vst [vmem:[%s1906_s13 + $0xb8] sm:$0xff] %v1529_v23   ;;  %v609_v28 = vadd.f32 %v1676_v26, %v1891_v40  ;;  %v737_v29 = vadd.f32 %v1708_v27, %v1891_v40  ;;  %v600_v30 = vpop.f32.mrb[17].mxu0  ;;  %v728_v31 = vpop.f32.mrb[17].mxu1 }
 0x11b   : > { %1576 = vst [vmem:[%s1906_s13 + $0x30] sm:$0xff] %v1444_v24   ;;  %1592 = vst [vmem:[%s1906_s13 + $0xb0] sm:$0xff] %v1524_v25   ;;  %v601_v32 = vadd.f32 %v1891_v40, %v600_v30  ;;  %v729_v33 = vadd.f32 %v1891_v40, %v728_v31  ;;  %v1677_v34 = vpop.f32.mrb[18].mxu0  ;;  %v1709_v35 = vpop.f32.mrb[18].mxu1 }
 0x11c   : > { %v612_v36 = vadd.f32 %v1677_v34, %v1891_v40  ;;  %v740_v37 = vadd.f32 %v1709_v35, %v1891_v40  ;;  %v603_v38 = vpop.f32.mrb[19].mxu0  ;;  %v731_v39 = vpop.f32.mrb[19].mxu1  ;;  %v809_v43 = vmax.f32 %v609_v28, 0.0  ;;  %v841_v44 = vmax.f32 %v737_v29, 0.0 }
 0x11d   : > { %v604_v41 = vadd.f32 %v1891_v40, %v603_v38  ;;  %v732_v42 = vadd.f32 %v1891_v40, %v731_v39  ;;  %v807_v47 = vmax.f32 %v601_v32, 0.0  ;;  %v839_v48 = vmax.f32 %v729_v33, 0.0 }
 0x11e   : > { %v810_v45 = vmax.f32 %v612_v36, 0.0  ;;  %v842_v46 = vmax.f32 %v740_v37, 0.0 }
 0x11f   : > { %v808_v49 = vmax.f32 %v604_v41, 0.0  ;;  %v840_v50 = vmax.f32 %v732_v42, 0.0 }
 0x120   : > { %v1459_v51 = vpack.c.bf16 %v810_v45, %v809_v43  ;;  %v1539_v52 = vpack.c.bf16 %v842_v46, %v841_v44 }
 0x121   : > { %v1454_v53 = vpack.c.bf16 %v808_v49, %v807_v47  ;;  %v1534_v54 = vpack.c.bf16 %v840_v50, %v839_v48  ;;  %v1680_v55 = vpop.f32.mrb[20].mxu0  ;;  %v1712_v56 = vpop.f32.mrb[20].mxu1 }
 0x122   : > { %1579 = vst [vmem:[%s1906_s13 + $0x48] sm:$0xff] %v1459_v51   ;;  %1595 = vst [vmem:[%s1906_s13 + $0xc8] sm:$0xff] %v1539_v52   ;;  %v625_v57 = vadd.f32 %v1680_v55, %v1891_v40  ;;  %v753_v58 = vadd.f32 %v1712_v56, %v1891_v40  ;;  %v616_v59 = vpop.f32.mrb[21].mxu0  ;;  %v744_v60 = vpop.f32.mrb[21].mxu1 }
 0x123   : > { %1578 = vst [vmem:[%s1906_s13 + $0x40] sm:$0xff] %v1454_v53   ;;  %1594 = vst [vmem:[%s1906_s13 + $0xc0] sm:$0xff] %v1534_v54   ;;  %v617_v61 = vadd.f32 %v1891_v40, %v616_v59  ;;  %v745_v62 = vadd.f32 %v1891_v40, %v744_v60  ;;  %v1681_v63 = vpop.f32.mrb[22].mxu0  ;;  %v1713_v0 = vpop.f32.mrb[22].mxu1 }
 0x124   : > { %v628_v1 = vadd.f32 %v1681_v63, %v1891_v40  ;;  %v756_v2 = vadd.f32 %v1713_v0, %v1891_v40  ;;  %v619_v3 = vpop.f32.mrb[23].mxu0  ;;  %v747_v4 = vpop.f32.mrb[23].mxu1  ;;  %v813_v7 = vmax.f32 %v625_v57, 0.0  ;;  %v845_v8 = vmax.f32 %v753_v58, 0.0 }
 0x125   : > { %v620_v5 = vadd.f32 %v1891_v40, %v619_v3  ;;  %v748_v6 = vadd.f32 %v1891_v40, %v747_v4  ;;  %v811_v11 = vmax.f32 %v617_v61, 0.0  ;;  %v843_v12 = vmax.f32 %v745_v62, 0.0 }
 0x126   : > { %v814_v9 = vmax.f32 %v628_v1, 0.0  ;;  %v846_v10 = vmax.f32 %v756_v2, 0.0 }
 0x127   : > { %v812_v13 = vmax.f32 %v620_v5, 0.0  ;;  %v844_v14 = vmax.f32 %v748_v6, 0.0 }
 0x128   : > { %v1469_v15 = vpack.c.bf16 %v814_v9, %v813_v7  ;;  %v1549_v16 = vpack.c.bf16 %v846_v10, %v845_v8 }
 0x129   : > { %v1464_v17 = vpack.c.bf16 %v812_v13, %v811_v11  ;;  %v1544_v18 = vpack.c.bf16 %v844_v14, %v843_v12  ;;  %v1684_v19 = vpop.f32.mrb[24].mxu0  ;;  %v1716_v20 = vpop.f32.mrb[24].mxu1 }
 0x12a   : > { %1581 = vst [vmem:[%s1906_s13 + $0x58] sm:$0xff] %v1469_v15   ;;  %1597 = vst [vmem:[%s1906_s13 + $0xd8] sm:$0xff] %v1549_v16   ;;  %v641_v21 = vadd.f32 %v1684_v19, %v1891_v40  ;;  %v769_v22 = vadd.f32 %v1716_v20, %v1891_v40  ;;  %v632_v23 = vpop.f32.mrb[25].mxu0  ;;  %v760_v24 = vpop.f32.mrb[25].mxu1 }
 0x12b   : > { %1580 = vst [vmem:[%s1906_s13 + $0x50] sm:$0xff] %v1464_v17   ;;  %1596 = vst [vmem:[%s1906_s13 + $0xd0] sm:$0xff] %v1544_v18   ;;  %v633_v25 = vadd.f32 %v1891_v40, %v632_v23  ;;  %v761_v26 = vadd.f32 %v1891_v40, %v760_v24  ;;  %v1685_v27 = vpop.f32.mrb[26].mxu0  ;;  %v1717_v28 = vpop.f32.mrb[26].mxu1 }
 0x12c   : > { %v644_v29 = vadd.f32 %v1685_v27, %v1891_v40  ;;  %v772_v30 = vadd.f32 %v1717_v28, %v1891_v40  ;;  %v635_v31 = vpop.f32.mrb[27].mxu0  ;;  %v763_v32 = vpop.f32.mrb[27].mxu1  ;;  %v817_v35 = vmax.f32 %v641_v21, 0.0  ;;  %v849_v36 = vmax.f32 %v769_v22, 0.0 }
 0x12d   : > { %v636_v33 = vadd.f32 %v1891_v40, %v635_v31  ;;  %v764_v34 = vadd.f32 %v1891_v40, %v763_v32  ;;  %v815_v39 = vmax.f32 %v633_v25, 0.0  ;;  %v847_v41 = vmax.f32 %v761_v26, 0.0 }
 0x12e   : > { %v818_v37 = vmax.f32 %v644_v29, 0.0  ;;  %v850_v38 = vmax.f32 %v772_v30, 0.0 }
 0x12f   : > { %v816_v42 = vmax.f32 %v636_v33, 0.0  ;;  %v848_v43 = vmax.f32 %v764_v34, 0.0 }
 0x130   : > { %v1479_v44 = vpack.c.bf16 %v818_v37, %v817_v35  ;;  %v1559_v45 = vpack.c.bf16 %v850_v38, %v849_v36 }
 0x131   : > { %v1474_v46 = vpack.c.bf16 %v816_v42, %v815_v39  ;;  %v1554_v47 = vpack.c.bf16 %v848_v43, %v847_v41  ;;  %v1688_v48 = vpop.f32.mrb[28].mxu0  ;;  %v1720_v49 = vpop.f32.mrb[28].mxu1 }
 0x132   : > { %1583 = vst [vmem:[%s1906_s13 + $0x68] sm:$0xff] %v1479_v44   ;;  %1599 = vst [vmem:[%s1906_s13 + $0xe8] sm:$0xff] %v1559_v45   ;;  %v657_v50 = vadd.f32 %v1688_v48, %v1891_v40  ;;  %v785_v51 = vadd.f32 %v1720_v49, %v1891_v40  ;;  %v648_v52 = vpop.f32.mrb[29].mxu0  ;;  %v776_v53 = vpop.f32.mrb[29].mxu1 }
 0x133   : > { %1582 = vst [vmem:[%s1906_s13 + $0x60] sm:$0xff] %v1474_v46   ;;  %1598 = vst [vmem:[%s1906_s13 + $0xe0] sm:$0xff] %v1554_v47   ;;  %v649_v54 = vadd.f32 %v1891_v40, %v648_v52  ;;  %v777_v55 = vadd.f32 %v1891_v40, %v776_v53  ;;  %v1689_v56 = vpop.f32.mrb[30].mxu0  ;;  %v1721_v57 = vpop.f32.mrb[30].mxu1 }
 0x134   : > { %v660_v58 = vadd.f32 %v1689_v56, %v1891_v40  ;;  %v788_v59 = vadd.f32 %v1721_v57, %v1891_v40  ;;  %v651_v60 = vpop.f32.mrb[31].mxu0  ;;  %v779_v61 = vpop.f32.mrb[31].mxu1  ;;  %v821_v0 = vmax.f32 %v657_v50, 0.0  ;;  %v853_v1 = vmax.f32 %v785_v51, 0.0 }
 0x135   : > { %v652_v62 = vadd.f32 %v1891_v40, %v651_v60  ;;  %v780_v63 = vadd.f32 %v1891_v40, %v779_v61  ;;  %v819_v4 = vmax.f32 %v649_v54, 0.0  ;;  %v851_v5 = vmax.f32 %v777_v55, 0.0 }
 0x136   : > { %v822_v2 = vmax.f32 %v660_v58, 0.0  ;;  %v854_v3 = vmax.f32 %v788_v59, 0.0 }
 0x137   : > { %v820_v6 = vmax.f32 %v652_v62, 0.0  ;;  %v852_v7 = vmax.f32 %v780_v63, 0.0 }
 0x138   : > { %v1489_v8 = vpack.c.bf16 %v822_v2, %v821_v0  ;;  %v1569_v9 = vpack.c.bf16 %v854_v3, %v853_v1 }
 0x139   : > { %v1484_v10 = vpack.c.bf16 %v820_v6, %v819_v4  ;;  %v1564_v11 = vpack.c.bf16 %v852_v7, %v851_v5 }
 0x13a   : > { %1585 = vst [vmem:[%s1906_s13 + $0x78] sm:$0xff] %v1489_v8   ;;  %1601 = vst [vmem:[%s1906_s13 + $0xf8] sm:$0xff] %v1569_v9  }
 0x13b   : > { %1584 = vst [vmem:[%s1906_s13 + $0x70] sm:$0xff] %v1484_v10   ;;  %1600 = vst [vmem:[%s1906_s13 + $0xf0] sm:$0xff] %v1564_v11  }
 0x13c PF: > { %s13_s12 = sadd.s32 1, %s1792_s12  }
 0x13d   : > { %p10_p4 = scmp.ge.s32.totalorder %s13_s12, 6  }
 0x13f   :  { %12 = sbr.rel (!%p10_p4) target bundleno = 1 (0x1), region = 62 }

// kernel: _forward_impl.6
= control target key start
LH: loop header
LB: loop body
LE: loop exit
PB: predicated region body
PF: predicated region fallthrough
CT: control target
= control target key end

     0   :  { %s1860_s1 = inlined_call_operand.vmem [shape: bf16[128,128], index: 1, kind: input, shape index: {}]   ;;  %s1861_s0 = inlined_call_operand.vmem [shape: bf16[512,128], index: 0, kind: input, shape index: {}]   ;;  %s1862_s2 = inlined_call_operand.vmem [shape: f32[1,128], index: 2, kind: input, shape index: {}]   ;;  %s1863_s3 = inlined_call_operand.vmem [shape: bf16[512,128], index: 3, kind: output, shape index: {}]  }
   0x1   :  { %v1515_v0 = vld [vmem:[%s1860_s1] sm:$0xff]   ;;  %v1516_v1 = vld [vmem:[%s1860_s1 + $0x8] sm:$0xff]   ;;  %v1517_v2 = vld [vmem:[%s1860_s1 + $0x10] sm:$0xff]  }
   0x2   :  { %1419 = vmatprep.subr.bf16.mxu0 %v1515_v0  ;;  %1499 = vmatprep.subr.bf16.mxu1 %v1515_v0  ;;  %v1518_v3 = vld [vmem:[%s1860_s1 + $0x18] sm:$0xff]   ;;  %v1523_v4 = vld [vmem:[%s1861_s0] sm:$0xff]   ;;  %v1520_v7 = vld [vmem:[%s1860_s1 + $0x28] sm:$0xff]  }
   0x3   :  { %1420 = vmatpush3.bf16.msra.mxu0 %v1515_v0  ;;  %1507 = vmatpush3.bf16.msra.mxu1 %v1515_v0  ;;  %v1524_v5 = vld [vmem:[%s1861_s0 + $0x80] sm:$0xff]   ;;  %v1521_v8 = vld [vmem:[%s1860_s1 + $0x30] sm:$0xff]   ;;  %v1522_v9 = vld [vmem:[%s1860_s1 + $0x38] sm:$0xff]  }
   0x4   :  { %1421 = vmatprep.subr.bf16.mxu0 %v1516_v1  ;;  %1500 = vmatprep.subr.bf16.mxu1 %v1516_v1  ;;  %v1519_v6 = vld [vmem:[%s1860_s1 + $0x20] sm:$0xff]   ;;  %v1525_v10 = vld [vmem:[%s1861_s0 + $0x8] sm:$0xff]   ;;  %v1527_v12 = vld [vmem:[%s1861_s0 + $0x10] sm:$0xff]  }
   0x5   :  { %1435 = vmatprep.mubr.bf16.mxu0 %v1523_v4  ;;  %1467 = vmatprep.mubr.bf16.mxu1 %v1524_v5  ;;  %v1526_v11 = vld [vmem:[%s1861_s0 + $0x88] sm:$0xff]   ;;  %v1528_v13 = vld [vmem:[%s1861_s0 + $0x90] sm:$0xff]   ;;  %v1529_v14 = vld [vmem:[%s1861_s0 + $0x18] sm:$0xff]  }
   0x6   :  { %v1530_v15 = vld [vmem:[%s1861_s0 + $0x98] sm:$0xff]   ;;  %v1531_v16 = vld [vmem:[%s1861_s0 + $0x20] sm:$0xff]   ;;  %v1533_v18 = vld [vmem:[%s1861_s0 + $0x28] sm:$0xff]  }
   0x7   :  { %1422 = vmatpush3.bf16.msra.mxu0 %v1516_v1  ;;  %1508 = vmatpush3.bf16.msra.mxu1 %v1516_v1  ;;  %v1532_v17 = vld [vmem:[%s1861_s0 + $0xa0] sm:$0xff]   ;;  %v1534_v19 = vld [vmem:[%s1861_s0 + $0xa8] sm:$0xff]   ;;  %v1535_v20 = vld [vmem:[%s1861_s0 + $0x30] sm:$0xff]  }
   0x8   :  { %1423 = vmatprep.subr.bf16.mxu0 %v1517_v2  ;;  %1501 = vmatprep.subr.bf16.mxu1 %v1517_v2  ;;  %v1536_v21 = vld [vmem:[%s1861_s0 + $0xb0] sm:$0xff]   ;;  %v1537_v22 = vld [vmem:[%s1861_s0 + $0x38] sm:$0xff]   ;;  %v1539_v24 = vld [vmem:[%s1861_s0 + $0x40] sm:$0xff]  }
   0x9   :  { %v1538_v23 = vld [vmem:[%s1861_s0 + $0xb8] sm:$0xff]   ;;  %v1540_v25 = vld [vmem:[%s1861_s0 + $0xc0] sm:$0xff]   ;;  %v1541_v26 = vld [vmem:[%s1861_s0 + $0x48] sm:$0xff]  }
   0xa   :  { %v1542_v27 = vld [vmem:[%s1861_s0 + $0xc8] sm:$0xff]   ;;  %v1543_v28 = vld [vmem:[%s1861_s0 + $0x50] sm:$0xff]   ;;  %v1545_v30 = vld [vmem:[%s1861_s0 + $0x58] sm:$0xff]  }
   0xb   :  { %1424 = vmatpush3.bf16.msra.mxu0 %v1517_v2  ;;  %1509 = vmatpush3.bf16.msra.mxu1 %v1517_v2  ;;  %v1544_v29 = vld [vmem:[%s1861_s0 + $0xd0] sm:$0xff]   ;;  %v1546_v31 = vld [vmem:[%s1861_s0 + $0xd8] sm:$0xff]   ;;  %v1547_v32 = vld [vmem:[%s1861_s0 + $0x60] sm:$0xff]  }
   0xc   :  { %1425 = vmatprep.subr.bf16.mxu0 %v1518_v3  ;;  %1502 = vmatprep.subr.bf16.mxu1 %v1518_v3  ;;  %v1548_v33 = vld [vmem:[%s1861_s0 + $0xe0] sm:$0xff]   ;;  %v1549_v34 = vld [vmem:[%s1861_s0 + $0x68] sm:$0xff]   ;;  %v1551_v36 = vld [vmem:[%s1861_s0 + $0x70] sm:$0xff]  }
   0xd   :  { %v1550_v35 = vld [vmem:[%s1861_s0 + $0xe8] sm:$0xff]   ;;  %v1552_v37 = vld [vmem:[%s1861_s0 + $0xf0] sm:$0xff]   ;;  %v1553_v38 = vld [vmem:[%s1861_s0 + $0x78] sm:$0xff]  }
   0xe   :  { %v1554_v39 = vld [vmem:[%s1861_s0 + $0xf8] sm:$0xff]   ;;  %v1698_v40 = vld [vmem:[%s1862_s2] ss:$0 sm:$0xff] }
   0xf   :  { %1426 = vmatpush3.bf16.msra.mxu0 %v1518_v3  ;;  %1510 = vmatpush3.bf16.msra.mxu1 %v1518_v3 }
  0x10   :  { %1427 = vmatprep.subr.bf16.mxu0 %v1519_v6  ;;  %1503 = vmatprep.subr.bf16.mxu1 %v1519_v6 }
  0x13   :  { %1428 = vmatpush3.bf16.msra.mxu0 %v1519_v6  ;;  %1511 = vmatpush3.bf16.msra.mxu1 %v1519_v6 }
  0x14   :  { %1429 = vmatprep.subr.bf16.mxu0 %v1520_v7  ;;  %1504 = vmatprep.subr.bf16.mxu1 %v1520_v7 }
  0x17   :  { %1430 = vmatpush3.bf16.msra.mxu0 %v1520_v7  ;;  %1512 = vmatpush3.bf16.msra.mxu1 %v1520_v7 }
  0x18   :  { %1431 = vmatprep.subr.bf16.mxu0 %v1521_v8  ;;  %1505 = vmatprep.subr.bf16.mxu1 %v1521_v8 }
  0x1b   :  { %1432 = vmatpush3.bf16.msra.mxu0 %v1521_v8  ;;  %1513 = vmatpush3.bf16.msra.mxu1 %v1521_v8 }
  0x1c   :  { %1433 = vmatprep.subr.bf16.mxu0 %v1522_v9  ;;  %1506 = vmatprep.subr.bf16.mxu1 %v1522_v9 }
  0x1f   :  { %1434 = vmatpush3.bf16.msra.mxu0 %v1522_v9  ;;  %1514 = vmatpush3.bf16.msra.mxu1 %v1522_v9 }
  0x22   :  { %1436 = vmatmul.mubr.bf16.vlgmr.msra.gmra.mrb[0].mxu0 %v1525_v10  ;;  %1468 = vmatmul.mubr.bf16.vlgmr.msra.gmra.mrb[0].mxu1 %v1526_v11 }
  0x23   :  { %1439 = vmatprep.mubr.bf16.mxu0 %v1527_v12  ;;  %1471 = vmatprep.mubr.bf16.mxu1 %v1528_v13 }
  0x2a   :  { %1440 = vmatmul.mubr.bf16.gmra.mrb[4].mxu0 %v1529_v14  ;;  %1472 = vmatmul.mubr.bf16.gmra.mrb[4].mxu1 %v1530_v15 }
  0x2b   :  { %1443 = vmatprep.mubr.bf16.mxu0 %v1531_v16  ;;  %1475 = vmatprep.mubr.bf16.mxu1 %v1532_v17 }
  0x32   :  { %1444 = vmatmul.mubr.bf16.gmra.mrb[8].mxu0 %v1533_v18  ;;  %1476 = vmatmul.mubr.bf16.gmra.mrb[8].mxu1 %v1534_v19 }
  0x33   :  { %1447 = vmatprep.mubr.bf16.mxu0 %v1535_v20  ;;  %1479 = vmatprep.mubr.bf16.mxu1 %v1536_v21 }
  0x3a   :  { %1448 = vmatmul.mubr.bf16.gmra.mrb[12].mxu0 %v1537_v22  ;;  %1480 = vmatmul.mubr.bf16.gmra.mrb[12].mxu1 %v1538_v23 }
  0x3b   :  { %1451 = vmatprep.mubr.bf16.mxu0 %v1539_v24  ;;  %1483 = vmatprep.mubr.bf16.mxu1 %v1540_v25 }
  0x42   :  { %1452 = vmatmul.mubr.bf16.gmra.mrb[16].mxu0 %v1541_v26  ;;  %1484 = vmatmul.mubr.bf16.gmra.mrb[16].mxu1 %v1542_v27 }
  0x43   :  { %1455 = vmatprep.mubr.bf16.mxu0 %v1543_v28  ;;  %1487 = vmatprep.mubr.bf16.mxu1 %v1544_v29 }
  0x4a   :  { %1456 = vmatmul.mubr.bf16.gmra.mrb[20].mxu0 %v1545_v30  ;;  %1488 = vmatmul.mubr.bf16.gmra.mrb[20].mxu1 %v1546_v31 }
  0x4b   :  { %1459 = vmatprep.mubr.bf16.mxu0 %v1547_v32  ;;  %1491 = vmatprep.mubr.bf16.mxu1 %v1548_v33 }
  0x52   :  { %1460 = vmatmul.mubr.bf16.gmra.mrb[24].mxu0 %v1549_v34  ;;  %1492 = vmatmul.mubr.bf16.gmra.mrb[24].mxu1 %v1550_v35 }
  0x53   :  { %1463 = vmatprep.mubr.bf16.mxu0 %v1551_v36  ;;  %1495 = vmatprep.mubr.bf16.mxu1 %v1552_v37 }
  0x5a   :  { %1464 = vmatmul.mubr.bf16.gmra.mrb[28].mxu0 %v1553_v38  ;;  %1496 = vmatmul.mubr.bf16.gmra.mrb[28].mxu1 %v1554_v39 }
  0xf5   :  { %v1437_v41 = vpop.f32.mrb[0].mxu0  ;;  %v1469_v42 = vpop.f32.mrb[0].mxu1 }
  0xf6   :  { %v385_v43 = vadd.f32 %v1437_v41, %v1698_v40  ;;  %v513_v44 = vadd.f32 %v1469_v42, %v1698_v40  ;;  %v376_v45 = vpop.f32.mrb[1].mxu0  ;;  %v504_v46 = vpop.f32.mrb[1].mxu1 }
  0xf7   :  { %v377_v47 = vadd.f32 %v1698_v40, %v376_v45  ;;  %v505_v48 = vadd.f32 %v1698_v40, %v504_v46  ;;  %v1438_v49 = vpop.f32.mrb[2].mxu0  ;;  %v1470_v50 = vpop.f32.mrb[2].mxu1 }
  0xf8   :  { %v388_v51 = vadd.f32 %v1438_v49, %v1698_v40  ;;  %v516_v52 = vadd.f32 %v1470_v50, %v1698_v40  ;;  %v379_v53 = vpop.f32.mrb[3].mxu0  ;;  %v507_v54 = vpop.f32.mrb[3].mxu1  ;;  %v633_v57 = vmax.f32 %v385_v43, 0.0  ;;  %v665_v58 = vmax.f32 %v513_v44, 0.0 }
  0xf9   :  { %v380_v55 = vadd.f32 %v1698_v40, %v379_v53  ;;  %v508_v56 = vadd.f32 %v1698_v40, %v507_v54  ;;  %v631_v61 = vmax.f32 %v377_v47, 0.0  ;;  %v663_v62 = vmax.f32 %v505_v48, 0.0 }
  0xfa   :  { %v634_v59 = vmax.f32 %v388_v51, 0.0  ;;  %v666_v60 = vmax.f32 %v516_v52, 0.0 }
  0xfb   :  { %v632_v63 = vmax.f32 %v380_v55, 0.0  ;;  %v664_v0 = vmax.f32 %v508_v56, 0.0 }
  0xfc   :  { %v1196_v1 = vpack.c.bf16 %v634_v59, %v633_v57  ;;  %v1276_v2 = vpack.c.bf16 %v666_v60, %v665_v58 }
  0xfd   :  { %v1191_v3 = vpack.c.bf16 %v632_v63, %v631_v61  ;;  %v1271_v4 = vpack.c.bf16 %v664_v0, %v663_v62  ;;  %v1441_v5 = vpop.f32.mrb[4].mxu0  ;;  %v1473_v6 = vpop.f32.mrb[4].mxu1 }
  0xfe   :  { %1348 = vst [vmem:[%s1863_s3 + $0x8] sm:$0xff] %v1196_v1   ;;  %1364 = vst [vmem:[%s1863_s3 + $0x88] sm:$0xff] %v1276_v2   ;;  %v401_v7 = vadd.f32 %v1441_v5, %v1698_v40  ;;  %v529_v8 = vadd.f32 %v1473_v6, %v1698_v40  ;;  %v392_v9 = vpop.f32.mrb[5].mxu0  ;;  %v520_v10 = vpop.f32.mrb[5].mxu1 }
  0xff   :  { %1192 = vst [vmem:[%s1863_s3] sm:$0xff] %v1191_v3   ;;  %1363 = vst [vmem:[%s1863_s3 + $0x80] sm:$0xff] %v1271_v4   ;;  %v393_v11 = vadd.f32 %v1698_v40, %v392_v9  ;;  %v521_v12 = vadd.f32 %v1698_v40, %v520_v10  ;;  %v1442_v13 = vpop.f32.mrb[6].mxu0  ;;  %v1474_v14 = vpop.f32.mrb[6].mxu1 }
 0x100   :  { %v404_v15 = vadd.f32 %v1442_v13, %v1698_v40  ;;  %v532_v16 = vadd.f32 %v1474_v14, %v1698_v40  ;;  %v395_v17 = vpop.f32.mrb[7].mxu0  ;;  %v523_v18 = vpop.f32.mrb[7].mxu1  ;;  %v637_v21 = vmax.f32 %v401_v7, 0.0  ;;  %v669_v22 = vmax.f32 %v529_v8, 0.0 }
 0x101   :  { %v396_v19 = vadd.f32 %v1698_v40, %v395_v17  ;;  %v524_v20 = vadd.f32 %v1698_v40, %v523_v18  ;;  %v635_v25 = vmax.f32 %v393_v11, 0.0  ;;  %v667_v26 = vmax.f32 %v521_v12, 0.0 }
 0x102   :  { %v638_v23 = vmax.f32 %v404_v15, 0.0  ;;  %v670_v24 = vmax.f32 %v532_v16, 0.0 }
 0x103   :  { %v636_v27 = vmax.f32 %v396_v19, 0.0  ;;  %v668_v28 = vmax.f32 %v524_v20, 0.0 }
 0x104   :  { %v1206_v29 = vpack.c.bf16 %v638_v23, %v637_v21  ;;  %v1286_v30 = vpack.c.bf16 %v670_v24, %v669_v22 }
 0x105   :  { %v1201_v31 = vpack.c.bf16 %v636_v27, %v635_v25  ;;  %v1281_v32 = vpack.c.bf16 %v668_v28, %v667_v26  ;;  %v1445_v33 = vpop.f32.mrb[8].mxu0  ;;  %v1477_v34 = vpop.f32.mrb[8].mxu1 }
 0x106   :  { %1350 = vst [vmem:[%s1863_s3 + $0x18] sm:$0xff] %v1206_v29   ;;  %1366 = vst [vmem:[%s1863_s3 + $0x98] sm:$0xff] %v1286_v30   ;;  %v417_v35 = vadd.f32 %v1445_v33, %v1698_v40  ;;  %v545_v36 = vadd.f32 %v1477_v34, %v1698_v40  ;;  %v408_v37 = vpop.f32.mrb[9].mxu0  ;;  %v536_v38 = vpop.f32.mrb[9].mxu1 }
 0x107   :  { %1349 = vst [vmem:[%s1863_s3 + $0x10] sm:$0xff] %v1201_v31   ;;  %1365 = vst [vmem:[%s1863_s3 + $0x90] sm:$0xff] %v1281_v32   ;;  %v409_v39 = vadd.f32 %v1698_v40, %v408_v37  ;;  %v537_v41 = vadd.f32 %v1698_v40, %v536_v38  ;;  %v1446_v42 = vpop.f32.mrb[10].mxu0  ;;  %v1478_v43 = vpop.f32.mrb[10].mxu1 }
 0x108   :  { %v420_v44 = vadd.f32 %v1446_v42, %v1698_v40  ;;  %v548_v45 = vadd.f32 %v1478_v43, %v1698_v40  ;;  %v411_v46 = vpop.f32.mrb[11].mxu0  ;;  %v539_v47 = vpop.f32.mrb[11].mxu1  ;;  %v641_v50 = vmax.f32 %v417_v35, 0.0  ;;  %v673_v51 = vmax.f32 %v545_v36, 0.0 }
 0x109   :  { %v412_v48 = vadd.f32 %v1698_v40, %v411_v46  ;;  %v540_v49 = vadd.f32 %v1698_v40, %v539_v47  ;;  %v639_v54 = vmax.f32 %v409_v39, 0.0  ;;  %v671_v55 = vmax.f32 %v537_v41, 0.0 }
 0x10a   :  { %v642_v52 = vmax.f32 %v420_v44, 0.0  ;;  %v674_v53 = vmax.f32 %v548_v45, 0.0 }
 0x10b   :  { %v640_v56 = vmax.f32 %v412_v48, 0.0  ;;  %v672_v57 = vmax.f32 %v540_v49, 0.0 }
 0x10c   :  { %v1216_v58 = vpack.c.bf16 %v642_v52, %v641_v50  ;;  %v1296_v59 = vpack.c.bf16 %v674_v53, %v673_v51 }
 0x10d   :  { %v1211_v60 = vpack.c.bf16 %v640_v56, %v639_v54  ;;  %v1291_v61 = vpack.c.bf16 %v672_v57, %v671_v55  ;;  %v1449_v62 = vpop.f32.mrb[12].mxu0  ;;  %v1481_v63 = vpop.f32.mrb[12].mxu1 }
 0x10e   :  { %1352 = vst [vmem:[%s1863_s3 + $0x28] sm:$0xff] %v1216_v58   ;;  %1368 = vst [vmem:[%s1863_s3 + $0xa8] sm:$0xff] %v1296_v59   ;;  %v433_v0 = vadd.f32 %v1449_v62, %v1698_v40  ;;  %v561_v1 = vadd.f32 %v1481_v63, %v1698_v40  ;;  %v424_v2 = vpop.f32.mrb[13].mxu0  ;;  %v552_v3 = vpop.f32.mrb[13].mxu1 }
 0x10f   :  { %1351 = vst [vmem:[%s1863_s3 + $0x20] sm:$0xff] %v1211_v60   ;;  %1367 = vst [vmem:[%s1863_s3 + $0xa0] sm:$0xff] %v1291_v61   ;;  %v425_v4 = vadd.f32 %v1698_v40, %v424_v2  ;;  %v553_v5 = vadd.f32 %v1698_v40, %v552_v3  ;;  %v1450_v6 = vpop.f32.mrb[14].mxu0  ;;  %v1482_v7 = vpop.f32.mrb[14].mxu1 }
 0x110   :  { %v436_v8 = vadd.f32 %v1450_v6, %v1698_v40  ;;  %v564_v9 = vadd.f32 %v1482_v7, %v1698_v40  ;;  %v427_v10 = vpop.f32.mrb[15].mxu0  ;;  %v555_v11 = vpop.f32.mrb[15].mxu1  ;;  %v645_v14 = vmax.f32 %v433_v0, 0.0  ;;  %v677_v15 = vmax.f32 %v561_v1, 0.0 }
 0x111   :  { %v428_v12 = vadd.f32 %v1698_v40, %v427_v10  ;;  %v556_v13 = vadd.f32 %v1698_v40, %v555_v11  ;;  %v643_v18 = vmax.f32 %v425_v4, 0.0  ;;  %v675_v19 = vmax.f32 %v553_v5, 0.0 }
 0x112   :  { %v646_v16 = vmax.f32 %v436_v8, 0.0  ;;  %v678_v17 = vmax.f32 %v564_v9, 0.0 }
 0x113   :  { %v644_v20 = vmax.f32 %v428_v12, 0.0  ;;  %v676_v21 = vmax.f32 %v556_v13, 0.0 }
 0x114   :  { %v1226_v22 = vpack.c.bf16 %v646_v16, %v645_v14  ;;  %v1306_v23 = vpack.c.bf16 %v678_v17, %v677_v15 }
 0x115   :  { %v1221_v24 = vpack.c.bf16 %v644_v20, %v643_v18  ;;  %v1301_v25 = vpack.c.bf16 %v676_v21, %v675_v19  ;;  %v1453_v26 = vpop.f32.mrb[16].mxu0  ;;  %v1485_v27 = vpop.f32.mrb[16].mxu1 }
 0x116   :  { %1354 = vst [vmem:[%s1863_s3 + $0x38] sm:$0xff] %v1226_v22   ;;  %1370 = vst [vmem:[%s1863_s3 + $0xb8] sm:$0xff] %v1306_v23   ;;  %v449_v28 = vadd.f32 %v1453_v26, %v1698_v40  ;;  %v577_v29 = vadd.f32 %v1485_v27, %v1698_v40  ;;  %v440_v30 = vpop.f32.mrb[17].mxu0  ;;  %v568_v31 = vpop.f32.mrb[17].mxu1 }
 0x117   :  { %1353 = vst [vmem:[%s1863_s3 + $0x30] sm:$0xff] %v1221_v24   ;;  %1369 = vst [vmem:[%s1863_s3 + $0xb0] sm:$0xff] %v1301_v25   ;;  %v441_v32 = vadd.f32 %v1698_v40, %v440_v30  ;;  %v569_v33 = vadd.f32 %v1698_v40, %v568_v31  ;;  %v1454_v34 = vpop.f32.mrb[18].mxu0  ;;  %v1486_v35 = vpop.f32.mrb[18].mxu1 }
 0x118   :  { %v452_v36 = vadd.f32 %v1454_v34, %v1698_v40  ;;  %v580_v37 = vadd.f32 %v1486_v35, %v1698_v40  ;;  %v443_v38 = vpop.f32.mrb[19].mxu0  ;;  %v571_v39 = vpop.f32.mrb[19].mxu1  ;;  %v649_v43 = vmax.f32 %v449_v28, 0.0  ;;  %v681_v44 = vmax.f32 %v577_v29, 0.0 }
 0x119   :  { %v444_v41 = vadd.f32 %v1698_v40, %v443_v38  ;;  %v572_v42 = vadd.f32 %v1698_v40, %v571_v39  ;;  %v647_v47 = vmax.f32 %v441_v32, 0.0  ;;  %v679_v48 = vmax.f32 %v569_v33, 0.0 }
 0x11a   :  { %v650_v45 = vmax.f32 %v452_v36, 0.0  ;;  %v682_v46 = vmax.f32 %v580_v37, 0.0 }
 0x11b   :  { %v648_v49 = vmax.f32 %v444_v41, 0.0  ;;  %v680_v50 = vmax.f32 %v572_v42, 0.0 }
 0x11c   :  { %v1236_v51 = vpack.c.bf16 %v650_v45, %v649_v43  ;;  %v1316_v52 = vpack.c.bf16 %v682_v46, %v681_v44 }
 0x11d   :  { %v1231_v53 = vpack.c.bf16 %v648_v49, %v647_v47  ;;  %v1311_v54 = vpack.c.bf16 %v680_v50, %v679_v48  ;;  %v1457_v55 = vpop.f32.mrb[20].mxu0  ;;  %v1489_v56 = vpop.f32.mrb[20].mxu1 }
 0x11e   :  { %1356 = vst [vmem:[%s1863_s3 + $0x48] sm:$0xff] %v1236_v51   ;;  %1372 = vst [vmem:[%s1863_s3 + $0xc8] sm:$0xff] %v1316_v52   ;;  %v465_v57 = vadd.f32 %v1457_v55, %v1698_v40  ;;  %v593_v58 = vadd.f32 %v1489_v56, %v1698_v40  ;;  %v456_v59 = vpop.f32.mrb[21].mxu0  ;;  %v584_v60 = vpop.f32.mrb[21].mxu1 }
 0x11f   :  { %1355 = vst [vmem:[%s1863_s3 + $0x40] sm:$0xff] %v1231_v53   ;;  %1371 = vst [vmem:[%s1863_s3 + $0xc0] sm:$0xff] %v1311_v54   ;;  %v457_v61 = vadd.f32 %v1698_v40, %v456_v59  ;;  %v585_v62 = vadd.f32 %v1698_v40, %v584_v60  ;;  %v1458_v63 = vpop.f32.mrb[22].mxu0  ;;  %v1490_v0 = vpop.f32.mrb[22].mxu1 }
 0x120   :  { %v468_v1 = vadd.f32 %v1458_v63, %v1698_v40  ;;  %v596_v2 = vadd.f32 %v1490_v0, %v1698_v40  ;;  %v459_v3 = vpop.f32.mrb[23].mxu0  ;;  %v587_v4 = vpop.f32.mrb[23].mxu1  ;;  %v653_v7 = vmax.f32 %v465_v57, 0.0  ;;  %v685_v8 = vmax.f32 %v593_v58, 0.0 }
 0x121   :  { %v460_v5 = vadd.f32 %v1698_v40, %v459_v3  ;;  %v588_v6 = vadd.f32 %v1698_v40, %v587_v4  ;;  %v651_v11 = vmax.f32 %v457_v61, 0.0  ;;  %v683_v12 = vmax.f32 %v585_v62, 0.0 }
 0x122   :  { %v654_v9 = vmax.f32 %v468_v1, 0.0  ;;  %v686_v10 = vmax.f32 %v596_v2, 0.0 }
 0x123   :  { %v652_v13 = vmax.f32 %v460_v5, 0.0  ;;  %v684_v14 = vmax.f32 %v588_v6, 0.0 }
 0x124   :  { %v1246_v15 = vpack.c.bf16 %v654_v9, %v653_v7  ;;  %v1326_v16 = vpack.c.bf16 %v686_v10, %v685_v8 }
 0x125   :  { %v1241_v17 = vpack.c.bf16 %v652_v13, %v651_v11  ;;  %v1321_v18 = vpack.c.bf16 %v684_v14, %v683_v12  ;;  %v1461_v19 = vpop.f32.mrb[24].mxu0  ;;  %v1493_v20 = vpop.f32.mrb[24].mxu1 }
 0x126   :  { %1358 = vst [vmem:[%s1863_s3 + $0x58] sm:$0xff] %v1246_v15   ;;  %1374 = vst [vmem:[%s1863_s3 + $0xd8] sm:$0xff] %v1326_v16   ;;  %v481_v21 = vadd.f32 %v1461_v19, %v1698_v40  ;;  %v609_v22 = vadd.f32 %v1493_v20, %v1698_v40  ;;  %v472_v23 = vpop.f32.mrb[25].mxu0  ;;  %v600_v24 = vpop.f32.mrb[25].mxu1 }
 0x127   :  { %1357 = vst [vmem:[%s1863_s3 + $0x50] sm:$0xff] %v1241_v17   ;;  %1373 = vst [vmem:[%s1863_s3 + $0xd0] sm:$0xff] %v1321_v18   ;;  %v473_v25 = vadd.f32 %v1698_v40, %v472_v23  ;;  %v601_v26 = vadd.f32 %v1698_v40, %v600_v24  ;;  %v1462_v27 = vpop.f32.mrb[26].mxu0  ;;  %v1494_v28 = vpop.f32.mrb[26].mxu1 }
 0x128   :  { %v484_v29 = vadd.f32 %v1462_v27, %v1698_v40  ;;  %v612_v30 = vadd.f32 %v1494_v28, %v1698_v40  ;;  %v475_v31 = vpop.f32.mrb[27].mxu0  ;;  %v603_v32 = vpop.f32.mrb[27].mxu1  ;;  %v657_v35 = vmax.f32 %v481_v21, 0.0  ;;  %v689_v36 = vmax.f32 %v609_v22, 0.0 }
 0x129   :  { %v476_v33 = vadd.f32 %v1698_v40, %v475_v31  ;;  %v604_v34 = vadd.f32 %v1698_v40, %v603_v32  ;;  %v655_v39 = vmax.f32 %v473_v25, 0.0  ;;  %v687_v41 = vmax.f32 %v601_v26, 0.0 }
 0x12a   :  { %v658_v37 = vmax.f32 %v484_v29, 0.0  ;;  %v690_v38 = vmax.f32 %v612_v30, 0.0 }
 0x12b   :  { %v656_v42 = vmax.f32 %v476_v33, 0.0  ;;  %v688_v43 = vmax.f32 %v604_v34, 0.0 }
 0x12c   :  { %v1256_v44 = vpack.c.bf16 %v658_v37, %v657_v35  ;;  %v1336_v45 = vpack.c.bf16 %v690_v38, %v689_v36 }
 0x12d   :  { %v1251_v46 = vpack.c.bf16 %v656_v42, %v655_v39  ;;  %v1331_v47 = vpack.c.bf16 %v688_v43, %v687_v41  ;;  %v1465_v48 = vpop.f32.mrb[28].mxu0  ;;  %v1497_v49 = vpop.f32.mrb[28].mxu1 }
 0x12e   :  { %1360 = vst [vmem:[%s1863_s3 + $0x68] sm:$0xff] %v1256_v44   ;;  %1376 = vst [vmem:[%s1863_s3 + $0xe8] sm:$0xff] %v1336_v45   ;;  %v497_v50 = vadd.f32 %v1465_v48, %v1698_v40  ;;  %v625_v51 = vadd.f32 %v1497_v49, %v1698_v40  ;;  %v488_v52 = vpop.f32.mrb[29].mxu0  ;;  %v616_v53 = vpop.f32.mrb[29].mxu1 }
 0x12f   :  { %1359 = vst [vmem:[%s1863_s3 + $0x60] sm:$0xff] %v1251_v46   ;;  %1375 = vst [vmem:[%s1863_s3 + $0xe0] sm:$0xff] %v1331_v47   ;;  %v489_v54 = vadd.f32 %v1698_v40, %v488_v52  ;;  %v617_v55 = vadd.f32 %v1698_v40, %v616_v53  ;;  %v1466_v56 = vpop.f32.mrb[30].mxu0  ;;  %v1498_v57 = vpop.f32.mrb[30].mxu1 }
 0x130   :  { %v500_v58 = vadd.f32 %v1466_v56, %v1698_v40  ;;  %v628_v59 = vadd.f32 %v1498_v57, %v1698_v40  ;;  %v491_v60 = vpop.f32.mrb[31].mxu0  ;;  %v619_v61 = vpop.f32.mrb[31].mxu1  ;;  %v661_v0 = vmax.f32 %v497_v50, 0.0  ;;  %v693_v1 = vmax.f32 %v625_v51, 0.0 }
 0x131   :  { %v492_v62 = vadd.f32 %v1698_v40, %v491_v60  ;;  %v620_v63 = vadd.f32 %v1698_v40, %v619_v61  ;;  %v659_v4 = vmax.f32 %v489_v54, 0.0  ;;  %v691_v5 = vmax.f32 %v617_v55, 0.0 }
 0x132   :  { %v662_v2 = vmax.f32 %v500_v58, 0.0  ;;  %v694_v3 = vmax.f32 %v628_v59, 0.0 }
 0x133   :  { %v660_v6 = vmax.f32 %v492_v62, 0.0  ;;  %v692_v7 = vmax.f32 %v620_v63, 0.0 }
 0x134   :  { %v1266_v8 = vpack.c.bf16 %v662_v2, %v661_v0  ;;  %v1346_v9 = vpack.c.bf16 %v694_v3, %v693_v1 }
 0x135   :  { %v1261_v10 = vpack.c.bf16 %v660_v6, %v659_v4  ;;  %v1341_v11 = vpack.c.bf16 %v692_v7, %v691_v5 }
 0x136   :  { %1362 = vst [vmem:[%s1863_s3 + $0x78] sm:$0xff] %v1266_v8   ;;  %1378 = vst [vmem:[%s1863_s3 + $0xf8] sm:$0xff] %v1346_v9  }
 0x137   :  { %1361 = vst [vmem:[%s1863_s3 + $0x70] sm:$0xff] %v1261_v10   ;;  %1377 = vst [vmem:[%s1863_s3 + $0xf0] sm:$0xff] %v1341_v11  }

// kernel: _forward_impl.7
= control target key start
LH: loop header
LB: loop body
LE: loop exit
PB: predicated region body
PF: predicated region fallthrough
CT: control target
= control target key end

     0   :  { %s618_s1 = inlined_call_operand.vmem [shape: bf16[128,128], index: 1, kind: input, shape index: {}]   ;;  %s619_s0 = inlined_call_operand.vmem [shape: bf16[128,128], index: 0, kind: input, shape index: {}]   ;;  %s620_s2 = inlined_call_operand.vmem [shape: f32[1,128], index: 2, kind: input, shape index: {}]   ;;  %s621_s3 = inlined_call_operand.vmem [shape: bf16[128,128], index: 3, kind: output, shape index: {}]  }
   0x1   :  { %v507_v0 = vld [vmem:[%s618_s1] sm:$0xff]   ;;  %v508_v1 = vld [vmem:[%s618_s1 + $0x8] sm:$0xff]   ;;  %v509_v2 = vld [vmem:[%s618_s1 + $0x10] sm:$0xff]  }
   0x2   :  { %459 = vmatprep.subr.bf16.mxu0 %v507_v0  ;;  %491 = vmatprep.subr.bf16.mxu1 %v507_v0  ;;  %v510_v3 = vld [vmem:[%s618_s1 + $0x18] sm:$0xff]   ;;  %v515_v4 = vld [vmem:[%s619_s0] sm:$0xff]   ;;  %v512_v7 = vld [vmem:[%s618_s1 + $0x28] sm:$0xff]  }
   0x3   :  { %460 = vmatpush3.bf16.msra.mxu0 %v507_v0  ;;  %499 = vmatpush3.bf16.msra.mxu1 %v507_v0  ;;  %v516_v5 = vld [vmem:[%s619_s0 + $0x20] sm:$0xff]   ;;  %v513_v8 = vld [vmem:[%s618_s1 + $0x30] sm:$0xff]   ;;  %v514_v9 = vld [vmem:[%s618_s1 + $0x38] sm:$0xff]  }
   0x4   :  { %461 = vmatprep.subr.bf16.mxu0 %v508_v1  ;;  %492 = vmatprep.subr.bf16.mxu1 %v508_v1  ;;  %v511_v6 = vld [vmem:[%s618_s1 + $0x20] sm:$0xff]   ;;  %v517_v10 = vld [vmem:[%s619_s0 + $0x8] sm:$0xff]   ;;  %v519_v12 = vld [vmem:[%s619_s0 + $0x10] sm:$0xff]  }
   0x5   :  { %475 = vmatprep.mubr.bf16.mxu0 %v515_v4  ;;  %483 = vmatprep.mubr.bf16.mxu1 %v516_v5  ;;  %v518_v11 = vld [vmem:[%s619_s0 + $0x28] sm:$0xff]   ;;  %v520_v13 = vld [vmem:[%s619_s0 + $0x30] sm:$0xff]   ;;  %v521_v14 = vld [vmem:[%s619_s0 + $0x18] sm:$0xff]  }
   0x6   :  { %v522_v15 = vld [vmem:[%s619_s0 + $0x38] sm:$0xff]   ;;  %v347_v16 = vld [vmem:[%s620_s2] ss:$0 sm:$0xff] }
   0x7   :  { %462 = vmatpush3.bf16.msra.mxu0 %v508_v1  ;;  %500 = vmatpush3.bf16.msra.mxu1 %v508_v1 }
   0x8   :  { %463 = vmatprep.subr.bf16.mxu0 %v509_v2  ;;  %493 = vmatprep.subr.bf16.mxu1 %v509_v2 }
   0xb   :  { %464 = vmatpush3.bf16.msra.mxu0 %v509_v2  ;;  %501 = vmatpush3.bf16.msra.mxu1 %v509_v2 }
   0xc   :  { %465 = vmatprep.subr.bf16.mxu0 %v510_v3  ;;  %494 = vmatprep.subr.bf16.mxu1 %v510_v3 }
   0xf   :  { %466 = vmatpush3.bf16.msra.mxu0 %v510_v3  ;;  %502 = vmatpush3.bf16.msra.mxu1 %v510_v3 }
  0x10   :  { %467 = vmatprep.subr.bf16.mxu0 %v511_v6  ;;  %495 = vmatprep.subr.bf16.mxu1 %v511_v6 }
  0x13   :  { %468 = vmatpush3.bf16.msra.mxu0 %v511_v6  ;;  %503 = vmatpush3.bf16.msra.mxu1 %v511_v6 }
  0x14   :  { %469 = vmatprep.subr.bf16.mxu0 %v512_v7  ;;  %496 = vmatprep.subr.bf16.mxu1 %v512_v7 }
  0x17   :  { %470 = vmatpush3.bf16.msra.mxu0 %v512_v7  ;;  %504 = vmatpush3.bf16.msra.mxu1 %v512_v7 }
  0x18   :  { %471 = vmatprep.subr.bf16.mxu0 %v513_v8  ;;  %497 = vmatprep.subr.bf16.mxu1 %v513_v8 }
  0x1b   :  { %472 = vmatpush3.bf16.msra.mxu0 %v513_v8  ;;  %505 = vmatpush3.bf16.msra.mxu1 %v513_v8 }
  0x1c   :  { %473 = vmatprep.subr.bf16.mxu0 %v514_v9  ;;  %498 = vmatprep.subr.bf16.mxu1 %v514_v9 }
  0x1f   :  { %474 = vmatpush3.bf16.msra.mxu0 %v514_v9  ;;  %506 = vmatpush3.bf16.msra.mxu1 %v514_v9 }
  0x22   :  { %476 = vmatmul.mubr.bf16.vlgmr.msra.gmra.mrb[0].mxu0 %v517_v10  ;;  %484 = vmatmul.mubr.bf16.vlgmr.msra.gmra.mrb[0].mxu1 %v518_v11 }
  0x23   :  { %479 = vmatprep.mubr.bf16.mxu0 %v519_v12  ;;  %487 = vmatprep.mubr.bf16.mxu1 %v520_v13 }
  0x2a   :  { %480 = vmatmul.mubr.bf16.gmra.mrb[4].mxu0 %v521_v14  ;;  %488 = vmatmul.mubr.bf16.gmra.mrb[4].mxu1 %v522_v15 }
  0xf5   :  { %v477_v17 = vpop.f32.mrb[0].mxu0  ;;  %v485_v18 = vpop.f32.mrb[0].mxu1 }
  0xf6   :  { %v193_v19 = vadd.f32 %v477_v17, %v347_v16  ;;  %v225_v20 = vadd.f32 %v485_v18, %v347_v16  ;;  %v184_v21 = vpop.f32.mrb[1].mxu0  ;;  %v216_v22 = vpop.f32.mrb[1].mxu1 }
  0xf7   :  { %v185_v23 = vadd.f32 %v347_v16, %v184_v21  ;;  %v217_v24 = vadd.f32 %v347_v16, %v216_v22  ;;  %v478_v25 = vpop.f32.mrb[2].mxu0  ;;  %v486_v26 = vpop.f32.mrb[2].mxu1 }
  0xf8   :  { %v196_v27 = vadd.f32 %v478_v25, %v347_v16  ;;  %v228_v28 = vadd.f32 %v486_v26, %v347_v16  ;;  %v187_v29 = vpop.f32.mrb[3].mxu0  ;;  %v219_v30 = vpop.f32.mrb[3].mxu1  ;;  %v249_v33 = vmax.f32 %v193_v19, 0.0  ;;  %v257_v34 = vmax.f32 %v225_v20, 0.0 }
  0xf9   :  { %v188_v31 = vadd.f32 %v347_v16, %v187_v29  ;;  %v220_v32 = vadd.f32 %v347_v16, %v219_v30  ;;  %v247_v37 = vmax.f32 %v185_v23, 0.0  ;;  %v255_v38 = vmax.f32 %v217_v24, 0.0 }
  0xfa   :  { %v250_v35 = vmax.f32 %v196_v27, 0.0  ;;  %v258_v36 = vmax.f32 %v228_v28, 0.0 }
  0xfb   :  { %v248_v39 = vmax.f32 %v188_v31, 0.0  ;;  %v256_v40 = vmax.f32 %v220_v32, 0.0 }
  0xfc   :  { %v404_v41 = vpack.c.bf16 %v250_v35, %v249_v33  ;;  %v424_v42 = vpack.c.bf16 %v258_v36, %v257_v34 }
  0xfd   :  { %v399_v43 = vpack.c.bf16 %v248_v39, %v247_v37  ;;  %v419_v44 = vpack.c.bf16 %v256_v40, %v255_v38  ;;  %v481_v45 = vpop.f32.mrb[4].mxu0  ;;  %v489_v46 = vpop.f32.mrb[4].mxu1 }
  0xfe   :  { %436 = vst [vmem:[%s621_s3 + $0x8] sm:$0xff] %v404_v41   ;;  %440 = vst [vmem:[%s621_s3 + $0x28] sm:$0xff] %v424_v42   ;;  %v209_v47 = vadd.f32 %v481_v45, %v347_v16  ;;  %v241_v48 = vadd.f32 %v489_v46, %v347_v16  ;;  %v200_v49 = vpop.f32.mrb[5].mxu0  ;;  %v232_v50 = vpop.f32.mrb[5].mxu1 }
  0xff   :  { %400 = vst [vmem:[%s621_s3] sm:$0xff] %v399_v43   ;;  %439 = vst [vmem:[%s621_s3 + $0x20] sm:$0xff] %v419_v44   ;;  %v201_v51 = vadd.f32 %v347_v16, %v200_v49  ;;  %v233_v52 = vadd.f32 %v347_v16, %v232_v50  ;;  %v482_v53 = vpop.f32.mrb[6].mxu0  ;;  %v490_v54 = vpop.f32.mrb[6].mxu1 }
 0x100   :  { %v212_v55 = vadd.f32 %v482_v53, %v347_v16  ;;  %v244_v56 = vadd.f32 %v490_v54, %v347_v16  ;;  %v203_v57 = vpop.f32.mrb[7].mxu0  ;;  %v235_v58 = vpop.f32.mrb[7].mxu1  ;;  %v253_v61 = vmax.f32 %v209_v47, 0.0  ;;  %v261_v62 = vmax.f32 %v241_v48, 0.0 }
 0x101   :  { %v204_v59 = vadd.f32 %v347_v16, %v203_v57  ;;  %v236_v60 = vadd.f32 %v347_v16, %v235_v58  ;;  %v251_v1 = vmax.f32 %v201_v51, 0.0  ;;  %v259_v2 = vmax.f32 %v233_v52, 0.0 }
 0x102   :  { %v254_v63 = vmax.f32 %v212_v55, 0.0  ;;  %v262_v0 = vmax.f32 %v244_v56, 0.0 }
 0x103   :  { %v252_v3 = vmax.f32 %v204_v59, 0.0  ;;  %v260_v4 = vmax.f32 %v236_v60, 0.0 }
 0x104   :  { %v414_v5 = vpack.c.bf16 %v254_v63, %v253_v61  ;;  %v434_v6 = vpack.c.bf16 %v262_v0, %v261_v62 }
 0x105   :  { %v409_v7 = vpack.c.bf16 %v252_v3, %v251_v1  ;;  %v429_v8 = vpack.c.bf16 %v260_v4, %v259_v2 }
 0x106   :  { %438 = vst [vmem:[%s621_s3 + $0x18] sm:$0xff] %v414_v5   ;;  %442 = vst [vmem:[%s621_s3 + $0x38] sm:$0xff] %v434_v6  }
 0x107   :  { %437 = vst [vmem:[%s621_s3 + $0x10] sm:$0xff] %v409_v7   ;;  %441 = vst [vmem:[%s621_s3 + $0x30] sm:$0xff] %v429_v8  }

// kernel: _forward_impl.8
= control target key start
LH: loop header
LB: loop body
LE: loop exit
PB: predicated region body
PF: predicated region fallthrough
CT: control target
= control target key end

     0   :  { %s446_s1 = inlined_call_operand.vmem [shape: bf16[256,128], index: 1, kind: input, shape index: {}]   ;;  %s447_s0 = inlined_call_operand.vmem [shape: bf16[32,256], index: 0, kind: input, shape index: {}]   ;;  %s448_s2 = inlined_call_operand.vmem [shape: f32[1,128], index: 2, kind: input, shape index: {}]   ;;  %s449_s3 = inlined_call_operand.vmem [shape: bf16[32,128], index: 3, kind: output, shape index: {}]  }
   0x1   :  { %v335_v0 = vld [vmem:[%s446_s1 + $0x40] sm:$0xff]   ;;  %v337_v2 = vld [vmem:[%s446_s1 + $0x48] sm:$0xff]   ;;  %v339_v4 = vld [vmem:[%s446_s1 + $0x50] sm:$0xff]  }
   0x2   :  { %v336_v1 = vld [vmem:[%s446_s1] sm:$0xff]   ;;  %291 = vmatprep.subr.bf16.mxu0 %v335_v0  ;;  %319 = vmatprep.subr.bf16.mxu1 %v335_v0  ;;  %v338_v3 = vld [vmem:[%s446_s1 + $0x8] sm:$0xff]   ;;  %v340_v5 = vld [vmem:[%s446_s1 + $0x10] sm:$0xff]  }
   0x3   :  { %292 = vmatpush3.bf16.msra.mxu0 %v336_v1  ;;  %327 = vmatpush3.bf16.msra.mxu1 %v336_v1  ;;  %v341_v6 = vld [vmem:[%s446_s1 + $0x58] sm:$0xff]   ;;  %v343_v8 = vld [vmem:[%s446_s1 + $0x60] sm:$0xff]   ;;  %v345_v10 = vld [vmem:[%s446_s1 + $0x68] sm:$0xff]  }
   0x4   :  { %293 = vmatprep.subr.bf16.mxu0 %v337_v2  ;;  %320 = vmatprep.subr.bf16.mxu1 %v337_v2  ;;  %v342_v7 = vld [vmem:[%s446_s1 + $0x18] sm:$0xff]   ;;  %v344_v9 = vld [vmem:[%s446_s1 + $0x20] sm:$0xff]   ;;  %v346_v13 = vld [vmem:[%s446_s1 + $0x28] sm:$0xff]  }
   0x5   :  { %v353_v11 = vld [vmem:[%s447_s0 + $0x4] ss:$8 sps:$4 sm:$0xff]   ;;  %v356_v12 = vld [vmem:[%s447_s0 + $0x14] ss:$8 sps:$4 sm:$0xff]   ;;  %v351_v18 = vld [vmem:[%s447_s0] ss:$8 sps:$4 sm:$0xff]  }
   0x6   :  { %v347_v14 = vld [vmem:[%s446_s1 + $0x70] sm:$0xff]   ;;  %206 = vmatprep.mubr.bf16.mxu0 %v353_v11  ;;  %214 = vmatprep.mubr.bf16.mxu1 %v356_v12  ;;  %v349_v16 = vld [vmem:[%s446_s1 + $0x78] sm:$0xff]   ;;  %v251_v22 = vld [vmem:[%s448_s2] ss:$0 sm:$0xff] }
   0x7   :  { %294 = vmatpush3.bf16.msra.mxu0 %v338_v3  ;;  %328 = vmatpush3.bf16.msra.mxu1 %v338_v3  ;;  %v348_v15 = vld [vmem:[%s446_s1 + $0x30] sm:$0xff]   ;;  %v350_v17 = vld [vmem:[%s446_s1 + $0x38] sm:$0xff]  }
   0x8   :  { %295 = vmatprep.subr.bf16.mxu0 %v339_v4  ;;  %321 = vmatprep.subr.bf16.mxu1 %v339_v4  ;;  %v354_v19 = vld [vmem:[%s447_s0 + $0x10] ss:$8 sps:$4 sm:$0xff]  }
   0xb   :  { %296 = vmatpush3.bf16.msra.mxu0 %v340_v5  ;;  %329 = vmatpush3.bf16.msra.mxu1 %v340_v5 }
   0xc   :  { %297 = vmatprep.subr.bf16.mxu0 %v341_v6  ;;  %322 = vmatprep.subr.bf16.mxu1 %v341_v6 }
   0xf   :  { %298 = vmatpush3.bf16.msra.mxu0 %v342_v7  ;;  %330 = vmatpush3.bf16.msra.mxu1 %v342_v7 }
  0x10   :  { %299 = vmatprep.subr.bf16.mxu0 %v343_v8  ;;  %323 = vmatprep.subr.bf16.mxu1 %v343_v8 }
  0x13   :  { %300 = vmatpush3.bf16.msra.mxu0 %v344_v9  ;;  %331 = vmatpush3.bf16.msra.mxu1 %v344_v9 }
  0x14   :  { %301 = vmatprep.subr.bf16.mxu0 %v345_v10  ;;  %324 = vmatprep.subr.bf16.mxu1 %v345_v10 }
  0x17   :  { %302 = vmatpush3.bf16.msra.mxu0 %v346_v13  ;;  %332 = vmatpush3.bf16.msra.mxu1 %v346_v13 }
  0x18   :  { %303 = vmatprep.subr.bf16.mxu0 %v347_v14  ;;  %325 = vmatprep.subr.bf16.mxu1 %v347_v14 }
  0x1b   :  { %304 = vmatpush3.bf16.msra.mxu0 %v348_v15  ;;  %333 = vmatpush3.bf16.msra.mxu1 %v348_v15 }
  0x1c   :  { %305 = vmatprep.subr.bf16.mxu0 %v349_v16  ;;  %326 = vmatprep.subr.bf16.mxu1 %v349_v16 }
  0x1f   :  { %306 = vmatpush3.bf16.msra.mxu0 %v350_v17  ;;  %334 = vmatpush3.bf16.msra.mxu1 %v350_v17 }
  0x22   :  { %207 = vmatmul.mubr.bf16.vlgmr.msra.gmra.mrb[0].mxu0 %v351_v18  ;;  %215 = vmatmul.mubr.bf16.vlgmr.msra.gmra.mrb[0].mxu1 %v354_v19 }
  0xf5   :  { %v307_v20 = vpop.f32.mrb[0].mxu0  ;;  %v313_v21 = vpop.f32.mrb[0].mxu1 }
  0xf6   :  { %v308_v23 = vpop.f32.mrb[1].mxu0  ;;  %v314_v24 = vpop.f32.mrb[1].mxu1 }
  0xf7   :  { %v309_v25 = vadd.f32 %v308_v23, %v307_v20  ;;  %v315_v26 = vadd.f32 %v314_v24, %v313_v21  ;;  %v310_v27 = vpop.f32.mrb[2].mxu0  ;;  %v316_v28 = vpop.f32.mrb[2].mxu1 }
  0xf8   :  { %v311_v29 = vpop.f32.mrb[3].mxu0  ;;  %v317_v30 = vpop.f32.mrb[3].mxu1 }
  0xf9   :  { %v209_v31 = vadd.f32 %v309_v25, %v251_v22  ;;  %v217_v32 = vadd.f32 %v315_v26, %v251_v22  ;;  %v312_v33 = vadd.f32 %v311_v29, %v310_v27  ;;  %v318_v34 = vadd.f32 %v317_v30, %v316_v28 }
  0xfb   :  { %v212_v35 = vadd.f32 %v312_v33, %v251_v22  ;;  %v220_v36 = vadd.f32 %v318_v34, %v251_v22  ;;  %v223_v37 = vmax.f32 %v209_v31, 0.0  ;;  %v225_v38 = vmax.f32 %v217_v32, 0.0 }
  0xfd   :  { %v224_v39 = vmax.f32 %v212_v35, 0.0  ;;  %v226_v40 = vmax.f32 %v220_v36, 0.0 }
  0xff   :  { %v283_v41 = vpack.c.bf16 %v224_v39, %v223_v37  ;;  %v288_v42 = vpack.c.bf16 %v226_v40, %v225_v38 }
 0x101   :  { %284 = vst [vmem:[%s449_s3] sm:$0xff] %v283_v41   ;;  %290 = vst [vmem:[%s449_s3 + $0x8] sm:$0xff] %v288_v42  }

// kernel: _forward_impl.9
= control target key start
LH: loop header
LB: loop body
LE: loop exit
PB: predicated region body
PF: predicated region fallthrough
CT: control target
= control target key end

     0   :  { %v450_v1 = vmov 0.0   ;;  %vm451_vm0 = vmmov 0   ;;  %s559_s1 = inlined_call_operand.vmem [shape: bf16[384,128], index: 1, kind: input, shape index: {}]   ;;  %s560_s0 = inlined_call_operand.vmem [shape: bf16[16,384], index: 0, kind: input, shape index: {}]   ;;  %s561_s2 = inlined_call_operand.vmem [shape: f32[1,128], index: 2, kind: input, shape index: {}]   ;;  %s562_s3 = inlined_call_operand.vmem [shape: bf16[16,128], index: 3, kind: output, shape index: {}]  }
   0x1   :  { %v422_v0 = vld [vmem:[%s559_s1 + $0x40] sm:$0xff]   ;;  %400 = vmatprep.subr.bf16.mxu1 %v450_v1  ;;  %416 = vmatprep.mubr.msk.bf16.mxu1 %vm451_vm0, %v450_v1  ;;  %v425_v4 = vld [vmem:[%s559_s1 + $0x48] sm:$0xff]   ;;  %v428_v7 = vld [vmem:[%s559_s1 + $0x50] sm:$0xff]  }
   0x2   :  { %v423_v2 = vld [vmem:[%s559_s1] sm:$0xff]   ;;  %369 = vmatprep.subr.bf16.mxu0 %v422_v0  ;;  %v426_v5 = vld [vmem:[%s559_s1 + $0x8] sm:$0xff]   ;;  %v429_v8 = vld [vmem:[%s559_s1 + $0x10] sm:$0xff]  }
   0x3   :  { %v424_v3 = vld [vmem:[%s559_s1 + $0x80] sm:$0xff]   ;;  %370 = vmatpush3.bf16.msra.mxu0 %v423_v2  ;;  %v427_v6 = vld [vmem:[%s559_s1 + $0x88] sm:$0xff]   ;;  %v430_v9 = vld [vmem:[%s559_s1 + $0x90] sm:$0xff]  }
   0x4   :  { %401 = vmatpush3.bf16.msra.mxu1 %v424_v3  ;;  %371 = vmatprep.subr.bf16.mxu0 %v425_v4  ;;  %v431_v10 = vld [vmem:[%s559_s1 + $0x58] sm:$0xff]   ;;  %v434_v13 = vld [vmem:[%s559_s1 + $0x60] sm:$0xff]   ;;  %v437_v16 = vld [vmem:[%s559_s1 + $0x68] sm:$0xff]  }
   0x5   :  { %402 = vmatprep.subr.bf16.mxu1 %v450_v1  ;;  %v432_v11 = vld [vmem:[%s559_s1 + $0x18] sm:$0xff]   ;;  %v435_v14 = vld [vmem:[%s559_s1 + $0x20] sm:$0xff]   ;;  %v438_v17 = vld [vmem:[%s559_s1 + $0x28] sm:$0xff]  }
   0x6   :  { %v433_v12 = vld [vmem:[%s559_s1 + $0x98] sm:$0xff]   ;;  %v436_v15 = vld [vmem:[%s559_s1 + $0xa0] sm:$0xff]   ;;  %v439_v18 = vld [vmem:[%s559_s1 + $0xa8] sm:$0xff]  }
   0x7   :  { %372 = vmatpush3.bf16.msra.mxu0 %v426_v5  ;;  %v440_v19 = vld [vmem:[%s559_s1 + $0x70] sm:$0xff]   ;;  %v443_v22 = vld [vmem:[%s559_s1 + $0x78] sm:$0xff]   ;;  %v445_v26 = vld [vmem:[%s560_s0] ss:$12 sps:$4 sm:$0xff]  }
   0x8   :  { %403 = vmatpush3.bf16.msra.mxu1 %v427_v6  ;;  %373 = vmatprep.subr.bf16.mxu0 %v428_v7  ;;  %v441_v20 = vld [vmem:[%s559_s1 + $0x30] sm:$0xff]   ;;  %v444_v24 = vld [vmem:[%s559_s1 + $0x38] sm:$0xff]   ;;  %v332_v30 = vld [vmem:[%s561_s2] ss:$0 sm:$0xff] }
   0x9   :  { %404 = vmatprep.subr.bf16.mxu1 %v450_v1  ;;  %v442_v21 = vld [vmem:[%s559_s1 + $0xb0] sm:$0xff]   ;;  %v448_v25 = vld [vmem:[%s559_s1 + $0xb8] sm:$0xff]  }
   0xa   :  { %v447_v23 = vld [vmem:[%s560_s0 + $0x4] ss:$12 sps:$4 sm:$0xff]   ;;  %v449_v27 = vld [vmem:[%s560_s0 + $0x8] ss:$12 sps:$4 sm:$0xff]  }
   0xb   :  { %374 = vmatpush3.bf16.msra.mxu0 %v429_v8  ;;  %266 = vmatprep.mubr.bf16.mxu0 %v447_v23 }
   0xc   :  { %405 = vmatpush3.bf16.msra.mxu1 %v430_v9  ;;  %375 = vmatprep.subr.bf16.mxu0 %v431_v10 }
   0xd   :  { %406 = vmatprep.subr.bf16.mxu1 %v450_v1 }
   0xf   :  { %376 = vmatpush3.bf16.msra.mxu0 %v432_v11 }
  0x10   :  { %407 = vmatpush3.bf16.msra.mxu1 %v433_v12  ;;  %377 = vmatprep.subr.bf16.mxu0 %v434_v13 }
  0x11   :  { %408 = vmatprep.subr.bf16.mxu1 %v450_v1 }
  0x13   :  { %378 = vmatpush3.bf16.msra.mxu0 %v435_v14 }
  0x14   :  { %409 = vmatpush3.bf16.msra.mxu1 %v436_v15  ;;  %379 = vmatprep.subr.bf16.mxu0 %v437_v16 }
  0x15   :  { %410 = vmatprep.subr.bf16.mxu1 %v450_v1 }
  0x17   :  { %380 = vmatpush3.bf16.msra.mxu0 %v438_v17 }
  0x18   :  { %411 = vmatpush3.bf16.msra.mxu1 %v439_v18  ;;  %381 = vmatprep.subr.bf16.mxu0 %v440_v19 }
  0x19   :  { %412 = vmatprep.subr.bf16.mxu1 %v450_v1 }
  0x1b   :  { %382 = vmatpush3.bf16.msra.mxu0 %v441_v20 }
  0x1c   :  { %413 = vmatpush3.bf16.msra.mxu1 %v442_v21  ;;  %383 = vmatprep.subr.bf16.mxu0 %v443_v22 }
  0x1d   :  { %414 = vmatprep.subr.bf16.mxu1 %v450_v1 }
  0x1f   :  { %384 = vmatpush3.bf16.msra.mxu0 %v444_v24 }
  0x20   :  { %415 = vmatpush3.bf16.msra.mxu1 %v448_v25 }
  0x22   :  { %267 = vmatmul.mubr.bf16.vlgmr.msra.gmra.mrb[0].mxu0 %v445_v26 }
  0x23   :  { %417 = vmatmul.mubr.bf16.vlgmr.msra.gmra.mrb[0].mxu1 %v449_v27 }
  0xf5   :  { %v385_v28 = vpop.f32.mrb[0].mxu0 }
  0xf6   :  { %v386_v29 = vpop.f32.mrb[1].mxu0  ;;  %v309_v31 = vpop.f32.mrb[0].mxu1 }
  0xf7   :  { %v387_v32 = vadd.f32 %v386_v29, %v385_v28  ;;  %v388_v33 = vpop.f32.mrb[2].mxu0  ;;  %v418_v34 = vpop.f32.mrb[1].mxu1 }
  0xf8   :  { %v389_v35 = vpop.f32.mrb[3].mxu0  ;;  %v312_v36 = vpop.f32.mrb[2].mxu1 }
  0xf9   :  { %v269_v37 = vadd.f32 %v387_v32, %v332_v30  ;;  %v390_v38 = vadd.f32 %v389_v35, %v388_v33  ;;  %v419_v39 = vpop.f32.mrb[3].mxu1 }
  0xfb   :  { %v310_v40 = vadd.f32 %v309_v31, %v269_v37  ;;  %v272_v41 = vadd.f32 %v390_v38, %v332_v30 }
  0xfd   :  { %v313_v42 = vadd.f32 %v312_v36, %v272_v41  ;;  %v316_v43 = vmax.f32 %v310_v40, 0.0 }
  0xff   :  { %v317_v44 = vmax.f32 %v313_v42, 0.0 }
 0x101   :  { %v367_v45 = vpack.c.bf16 %v317_v44, %v316_v43 }
 0x103   :  { %368 = vst [vmem:[%s562_s3] sm:$0xff] %v367_v45  }

</bundles_post_ra>
